<compile_context>
chip_gen: v7x
topology: tpu7x:2x2x1
jax: 0.10.0
libtpu: 0.0.40
codegen_flags: <defaults>
</compile_context>

<pallas_src>
import jax
import jax.numpy as jnp
from jax.experimental import pallas as pl
from jax.experimental.pallas import tpu as pltpu

LANE = 128  # hidden / class dims are zero-padded to this lane width


# ----------------------------- hardware-aware budgeting & tiling -----------------------------

def _vmem_budget_bytes():
    """Generation-aware scoped-VMEM budget (v5e/v6e: ~90 MiB, v7x: ~45 MiB)."""
    try:
        cap = int(pltpu.get_tpu_info().vmem_capacity_bytes)
        if cap < 16 * 1024 * 1024:
            cap = 64 * 1024 * 1024
    except Exception:
        cap = 64 * 1024 * 1024  # conservative (v7x-sized) fallback
    return int(min(cap * 0.7, 96 * 1024 * 1024))


def _ceil_to(n, m):
    return ((n + m - 1) // m) * m


def _tile_plan(n, budget):
    """Pick (n_pad, tm, tk, m_resident) for the O(N^2) aggregation kernels."""
    if n <= 256:
        return 256, 256, 256, True
    # Large reduction tile tk amortizes the ~0.35us per-grid-step overhead; cap padding
    # waste at ~25% (or one tile) of N.
    tk = 256
    for cand in (2048, 1024, 512, 256):
        n_pad_c = _ceil_to(n, cand)
        if n_pad_c - n <= max(n // 4, 256):
            tk = cand
            break
    n_pad = _ceil_to(n, tk)
    tm = min(512, tk)

    def usage(resident):
        a_bytes = 2 * tm * tk * 2                                  # double-buffered A tile (bf16)
        m_bytes = (2 * n_pad * LANE * 2) if resident else (2 * tk * LANE * 2)
        acc_bytes = tm * LANE * 4                                  # f32 accumulator
        out_bytes = 2 * tm * LANE * 4                              # double-buffered output
        misc = 2 * (LANE * LANE * 2 + LANE * 4)                    # W2 + biases
        return a_bytes + m_bytes + acc_bytes + out_bytes + misc

    m_resident = usage(True) <= int(budget * 0.8)
    while usage(m_resident) > int(budget * 0.8) and tk > 256:
        tk //= 2
        tm = min(tm, tk)
    return n_pad, tm, tk, m_resident


def _pad_up(n, m=LANE):
    return _ceil_to(n, m)


# ------------------------ feature transform:  M1 = X @ W1 (hoisted) --------------------------

def transform_kernel(x_ref, w_ref, out_ref):
    out_ref[...] = jnp.dot(
        x_ref[...], w_ref[...], preferred_element_type=jnp.float32
    ).astype(out_ref.dtype)


def feature_transform(x_bf, w_bf, *, tm, vmem_limit):
    n_pad, f = x_bf.shape
    h = w_bf.shape[1]
    return pl.pallas_call(
        transform_kernel,
        out_shape=jax.ShapeDtypeStruct((n_pad, h), jnp.bfloat16),
        grid=(n_pad // tm,),
        in_specs=[pl.BlockSpec((tm, f), lambda i: (i, 0)),
                  pl.BlockSpec((f, h), lambda i: (0, 0))],
        out_specs=pl.BlockSpec((tm, h), lambda i: (i, 0)),
        compiler_params=pltpu.CompilerParams(
            dimension_semantics=("parallel",),
            vmem_limit_bytes=vmem_limit),
    )(x_bf, w_bf)


# ------------- layer 1: M2 = relu(A_hat @ M1 + b1) @ W2   (fused epilogue, bf16 out) ---------

def make_layer1_kernel(tk, m_resident):
    def kernel(a_ref, m_ref, b_ref, w2_ref, out_ref, acc_ref):
        k = pl.program_id(1)
        if m_resident:
            off = pl.multiple_of(k * tk, tk)
            m_tile = m_ref[pl.ds(off, tk), :]
        else:
            m_tile = m_ref[...]
        prod = jnp.dot(a_ref[...], m_tile, preferred_element_type=jnp.float32)

        @pl.when(k == 0)
        def _():
            acc_ref[...] = prod

        @pl.when(k != 0)
        def _():
            acc_ref[...] += prod

        @pl.when(k == pl.num_programs(1) - 1)
        def _():
            h = jnp.maximum(acc_ref[...] + b_ref[...], 0.0)
            # Dropout(p=0.2) is identity at inference (training=False).
            # TODO(synk): training-mode dropout would use pltpu.prng_seed/stateful_bernoulli.
            out_ref[...] = jnp.dot(h.astype(w2_ref.dtype), w2_ref[...],
                                   preferred_element_type=jnp.float32
                                   ).astype(out_ref.dtype)
    return kernel


def gcn_layer1(a_bf, m1_bf, b1p, w2p_bf, *, tm, tk, m_resident, vmem_limit):
    n_pad = a_bf.shape[0]
    h = m1_bf.shape[1]
    c = w2p_bf.shape[1]
    grid = (n_pad // tm, n_pad // tk)
    m_spec = (pl.BlockSpec((n_pad, h), lambda i, k: (0, 0)) if m_resident
              else pl.BlockSpec((tk, h), lambda i, k: (k, 0)))
    cost = pl.CostEstimate(
        flops=2 * n_pad * n_pad * h + 2 * n_pad * h * c,
        transcendentals=0,
        bytes_accessed=a_bf.size * 2 + m1_bf.size * 2 + n_pad * c * 2)
    return pl.pallas_call(
        make_layer1_kernel(tk, m_resident),
        out_shape=jax.ShapeDtypeStruct((n_pad, c), jnp.bfloat16),
        grid=grid,
        in_specs=[pl.BlockSpec((tm, tk), lambda i, k: (i, k)),   # A_hat tile (streamed)
                  m_spec,                                        # M1 (VMEM-resident or streamed)
                  pl.BlockSpec((1, h), lambda i, k: (0, 0)),     # b1 (resident)
                  pl.BlockSpec((h, c), lambda i, k: (0, 0))],    # W2 (resident, ~32 KiB)
        out_specs=pl.BlockSpec((tm, c), lambda i, k: (i, 0)),
        scratch_shapes=[pltpu.VMEM((tm, h), jnp.float32)],
        compiler_params=pltpu.CompilerParams(
            dimension_semantics=("parallel", "arbitrary"),
            vmem_limit_bytes=vmem_limit),
        cost_estimate=cost,
    )(a_bf, m1_bf, b1p, w2p_bf)


# ------------------- layer 2: log_softmax(A_hat @ M2 + b2)  (masked, f32 out) ----------------

def make_layer2_kernel(tk, m_resident, num_valid):
    def kernel(a_ref, m_ref, b_ref, out_ref, acc_ref):
        k = pl.program_id(1)
        if m_resident:
            off = pl.multiple_of(k * tk, tk)
            m_tile = m_ref[pl.ds(off, tk), :]
        else:
            m_tile = m_ref[...]
        prod = jnp.dot(a_ref[...], m_tile, preferred_element_type=jnp.float32)

        @pl.when(k == 0)
        def _():
            acc_ref[...] = prod

        @pl.when(k != 0)
        def _():
            acc_ref[...] += prod

        @pl.when(k == pl.num_programs(1) - 1)
        def _():
            z = acc_ref[...] + b_ref[...]
            lane = jax.lax.broadcasted_iota(jnp.int32, z.shape, 1)
            valid = lane < num_valid
            zm = jnp.where(valid, z, -jnp.inf)
            mx = jnp.max(zm, axis=1, keepdims=True)
            s = zm - mx
            lse = jnp.log(jnp.sum(jnp.where(valid, jnp.exp(s), 0.0),
                                  axis=1, keepdims=True))
            out_ref[...] = jnp.where(valid, s - lse, 0.0).astype(out_ref.dtype)
    return kernel


def gcn_layer2(a_bf, m2_bf, b2p, *, num_valid, tm, tk, m_resident, vmem_limit):
    n_pad = a_bf.shape[0]
    c = m2_bf.shape[1]
    grid = (n_pad // tm, n_pad // tk)
    m_spec = (pl.BlockSpec((n_pad, c), lambda i, k: (0, 0)) if m_resident
              else pl.BlockSpec((tk, c), lambda i, k: (k, 0)))
    cost = pl.CostEstimate(
        flops=2 * n_pad * n_pad * c,
        transcendentals=n_pad * c,
        bytes_accessed=a_bf.size * 2 + m2_bf.size * 2 + n_pad * c * 4)
    return pl.pallas_call(
        make_layer2_kernel(tk, m_resident, num_valid),
        out_shape=jax.ShapeDtypeStruct((n_pad, c), jnp.float32),
        grid=grid,
        in_specs=[pl.BlockSpec((tm, tk), lambda i, k: (i, k)),
                  m_spec,
                  pl.BlockSpec((1, c), lambda i, k: (0, 0))],
        out_specs=pl.BlockSpec((tm, c), lambda i, k: (i, 0)),
        scratch_shapes=[pltpu.VMEM((tm, c), jnp.float32)],
        compiler_params=pltpu.CompilerParams(
            dimension_semantics=("parallel", "arbitrary"),
            vmem_limit_bytes=vmem_limit),
        cost_estimate=cost,
    )(a_bf, m2_bf, b2p)


# ------------------------------ graph glue (cached, outside jit) -----------------------------

def build_normalized_adjacency_bf16(edge_index, num_nodes, n_pad):
    """Dense A_hat = D^{-1/2}(A+I)D^{-1/2}, normalized+cast to bf16 and zero-padded to n_pad.

    Built ONCE per graph, outside the jitted forward (dominant cost for static graphs).
    """
    src, dst = edge_index[0], edge_index[1]
    loop = jnp.arange(num_nodes, dtype=edge_index.dtype)
    src = jnp.concatenate([src, loop])
    dst = jnp.concatenate([dst, loop])
    adj = jnp.zeros((num_nodes, num_nodes), jnp.float32)
    adj = adj.at[dst, src].add(1.0)           # row i aggregates from its neighbors j
    deg = jnp.sum(adj, axis=1)
    dinv = jnp.where(deg > 0, 1.0 / jnp.sqrt(deg), 0.0)
    a_hat = (dinv[:, None] * adj * dinv[None, :]).astype(jnp.bfloat16)
    a_pad = jnp.zeros((n_pad, n_pad), jnp.bfloat16).at[:num_nodes, :num_nodes].set(a_hat)
    return a_pad


# ----------------------------------------- forward -------------------------------------------

def simple_gnn_forward(x, a_pad_bf16, params):
    n, f = x.shape
    w1, b1, w2, b2 = params
    hidden = w1.shape[1]
    num_classes = w2.shape[1]

    budget = _vmem_budget_bytes()
    n_pad, tm, tk, m_resident = _tile_plan(n, budget)
    assert a_pad_bf16.shape == (n_pad, n_pad), "adjacency must be padded with the same plan"

    h_pad = _pad_up(hidden)
    c_pad = _pad_up(num_classes)

    # Zero-padded, lane-dense parameters (bf16 MXU operands; biases stay f32).
    w1p = jnp.zeros((f, h_pad), jnp.bfloat16).at[:, :hidden].set(w1.astype(jnp.bfloat16))
    b1p = jnp.zeros((1, h_pad), jnp.float32).at[0, :hidden].set(b1)
    w2p = jnp.zeros((h_pad, c_pad), jnp.bfloat16).at[:hidden, :num_classes].set(
        w2.astype(jnp.bfloat16))
    b2p = jnp.zeros((1, c_pad), jnp.float32).at[0, :num_classes].set(b2)

    x_pad = jnp.zeros((n_pad, f), jnp.bfloat16).at[:n, :].set(x.astype(jnp.bfloat16))

    # layer 1 (fused): M2 = relu(A_hat @ (X @ W1) + b1) @ W2     (dropout = identity, inference)
    m1 = feature_transform(x_pad, w1p, tm=tm, vmem_limit=budget)
    m2 = gcn_layer1(a_pad_bf16, m1, b1p, w2p,
                    tm=tm, tk=tk, m_resident=m_resident, vmem_limit=budget)

    # layer 2: log_softmax(A_hat @ M2 + b2, axis=1)  over the real class lanes
    out_pad = gcn_layer2(a_pad_bf16, m2, b2p, num_valid=num_classes,
                         tm=tm, tk=tk, m_resident=m_resident, vmem_limit=budget)

    return out_pad[:n, :num_classes]


def init_params(key, num_features, num_classes, hidden=16):
    k1, k2 = jax.random.split(key)
    w1 = jax.random.normal(k1, (num_features, hidden), jnp.float32) * (
        1.0 / jnp.sqrt(jnp.float32(num_features)))
    b1 = jnp.zeros((hidden,), jnp.float32)
    w2 = jax.random.normal(k2, (hidden, num_classes), jnp.float32) * (
        1.0 / jnp.sqrt(jnp.float32(hidden)))
    b2 = jnp.zeros((num_classes,), jnp.float32)
    return w1, b1, w2, b2


def _reference_forward(x, edge_index, params):
    w1, b1, w2, b2 = params
    src, dst = edge_index[0], edge_index[1]
    n = x.shape[0]
    loop = jnp.arange(n, dtype=edge_index.dtype)
    src = jnp.concatenate([src, loop])
    dst = jnp.concatenate([dst, loop])
    adj = jnp.zeros((n, n), jnp.float32).at[dst, src].add(1.0)
    deg = jnp.sum(adj, axis=1)
    dinv = jnp.where(deg > 0, 1.0 / jnp.sqrt(deg), 0.0)
    a = dinv[:, None] * adj * dinv[None, :]
    h = jnp.maximum(a @ (x @ w1) + b1, 0.0)
    z = a @ (h @ w2) + b2
    return jax.nn.log_softmax(z, axis=1)


if __name__ == "__main__":
    key = jax.random.PRNGKey(0)
    kx, kp = jax.random.split(key)

    num_nodes = 8
    num_features = 32
    num_classes = 8

    # node features
    x = jax.random.normal(kx, (num_nodes, num_features), jnp.float32)

    # deterministic ring graph, both directions: E = 2 * num_nodes
    i = jnp.arange(num_nodes, dtype=jnp.int32)
    src = jnp.concatenate([i, (i + 1) % num_nodes])
    dst = jnp.concatenate([(i + 1) % num_nodes, i])
    edge_index = jnp.stack([src, dst], axis=0)

    params = init_params(kp, num_features, num_classes)

    # A_hat is built, normalized, bf16-cast and padded ONCE per graph, outside the forward jit.
    n_pad, _, _, _ = _tile_plan(num_nodes, _vmem_budget_bytes())
    a_pad = build_normalized_adjacency_bf16(edge_index, num_nodes, n_pad)
    jax.block_until_ready(a_pad)

    fwd = jax.jit(simple_gnn_forward)
    out = fwd(x, a_pad, params)
    jax.block_until_ready(out)

    assert out.shape == (num_nodes, num_classes)
    # rows of log_softmax must sum (after exp) to 1
    assert jnp.allclose(jnp.sum(jnp.exp(out), axis=1), 1.0, atol=1e-3)
    # bf16-operand kernels vs f32 pure-JAX reference (loose tolerance for bf16 matmuls)
    ref = _reference_forward(x, edge_index, params)
    assert jnp.allclose(out, ref, atol=1e-1)
    print("KERNEL_OK")
</pallas_src>

<mosaic_0001>
module attributes {stable_mosaic.version = 11 : i64} {
  func.func @kernel(%arg0: i32, %arg1: i32, %arg2: memref<256x256xbf16, #tpu.memory_space<vmem>>, %arg3: memref<256x128xbf16, #tpu.memory_space<vmem>>, %arg4: memref<1x128xf32, #tpu.memory_space<vmem>>, %arg5: memref<128x128xbf16, #tpu.memory_space<vmem>>, %arg6: memref<256x128xbf16, #tpu.memory_space<vmem>>, %arg7: memref<256x128xf32, #tpu.memory_space<vmem>>) attributes {dimension_semantics = [#tpu.dimension_semantics<parallel>, #tpu.dimension_semantics<arbitrary>], iteration_bounds = array<i64: 1, 1>, scalar_prefetch = 0 : i64, scratch_operands = 1 : i64, tpu.core_type = #tpu.core_type<tc>, window_params = [{transform_indices = @transform_0, window_bounds = array<i64: 256, 256>}, {pipeline_mode = #tpu.pipeline_mode<synchronous>, transform_indices = @transform_1, window_bounds = array<i64: 256, 128>}, {pipeline_mode = #tpu.pipeline_mode<synchronous>, transform_indices = @transform_2, window_bounds = array<i64: 1, 128>}, {pipeline_mode = #tpu.pipeline_mode<synchronous>, transform_indices = @transform_3, window_bounds = array<i64: 128, 128>}, {transform_indices = @transform_4, window_bounds = array<i64: 256, 128>}]} {
    %c256_i32 = arith.constant 256 : i32
    %0 = arith.muli %arg1, %c256_i32 : i32
    %1 = tpu.assume_multiple %0, 256 : i32
    %2 = arith.index_cast %1 : i32 to index
    %c0 = arith.constant 0 : index
    %3 = vector.load %arg3[%2, %c0] : memref<256x128xbf16, #tpu.memory_space<vmem>>, vector<256x128xbf16>
    %c0_0 = arith.constant 0 : index
    %c0_1 = arith.constant 0 : index
    %4 = vector.load %arg2[%c0_0, %c0_1] : memref<256x256xbf16, #tpu.memory_space<vmem>>, vector<256x256xbf16>
    %cst = arith.constant dense<0.000000e+00> : vector<256x128xf32>
    %5 = tpu.matmul %4, %3, %cst {dimension_numbers = #tpu.dot_dimension_numbers<[1], [0], [0], [1], [0, 0, 1, 1], [], []>} : vector<256x256xbf16>, vector<256x128xbf16>, vector<256x128xf32> -> vector<256x128xf32>
    %c0_i32 = arith.constant 0 : i32
    %6 = arith.cmpi eq, %arg1, %c0_i32 : i32
    %7 = arith.extui %6 : i1 to i32
    %c0_i32_2 = arith.constant 0 : i32
    %8 = arith.cmpi ne, %7, %c0_i32_2 : i32
    scf.if %8 {
      %c0_7 = arith.constant 0 : index
      %c0_8 = arith.constant 0 : index
      %15 = vector.load %arg7[%c0_7, %c0_8] : memref<256x128xf32, #tpu.memory_space<vmem>>, vector<256x128xf32>
      tpu.vector_store %arg7[%c0_7, %c0_8], %5 {strides = array<i32>} : memref<256x128xf32, #tpu.memory_space<vmem>>, vector<256x128xf32>,
    } else {
    }
    %c0_i32_3 = arith.constant 0 : i32
    %9 = arith.cmpi ne, %arg1, %c0_i32_3 : i32
    %10 = arith.extui %9 : i1 to i32
    %c0_i32_4 = arith.constant 0 : i32
    %11 = arith.cmpi ne, %10, %c0_i32_4 : i32
    scf.if %11 {
      %c0_7 = arith.constant 0 : index
      %c0_8 = arith.constant 0 : index
      %15 = vector.load %arg7[%c0_7, %c0_8] : memref<256x128xf32, #tpu.memory_space<vmem>>, vector<256x128xf32>
      %16 = arith.addf %15, %5 : vector<256x128xf32>
      %c0_9 = arith.constant 0 : index
      %c0_10 = arith.constant 0 : index
      %17 = vector.load %arg7[%c0_9, %c0_10] : memref<256x128xf32, #tpu.memory_space<vmem>>, vector<256x128xf32>
      tpu.vector_store %arg7[%c0_9, %c0_10], %16 {strides = array<i32>} : memref<256x128xf32, #tpu.memory_space<vmem>>, vector<256x128xf32>,
    } else {
    }
    %c0_i32_5 = arith.constant 0 : i32
    %12 = arith.cmpi eq, %arg1, %c0_i32_5 : i32
    %13 = arith.extui %12 : i1 to i32
    %c0_i32_6 = arith.constant 0 : i32
    %14 = arith.cmpi ne, %13, %c0_i32_6 : i32
    scf.if %14 {
      %c0_7 = arith.constant 0 : index
      %c0_8 = arith.constant 0 : index
      %15 = vector.load %arg7[%c0_7, %c0_8] : memref<256x128xf32, #tpu.memory_space<vmem>>, vector<256x128xf32>
      %c0_9 = arith.constant 0 : index
      %c0_10 = arith.constant 0 : index
      %16 = vector.load %arg4[%c0_9, %c0_10] : memref<1x128xf32, #tpu.memory_space<vmem>>, vector<1x128xf32>
      %17 = vector.broadcast %16 : vector<1x128xf32> to vector<256x128xf32>
      %18 = arith.addf %15, %17 : vector<256x128xf32>
      %cst_11 = arith.constant 0.000000e+00 : f32
      %19 = vector.broadcast %cst_11 : f32 to vector<256x128xf32>
      %20 = arith.maximumf %18, %19 : vector<256x128xf32>
      %21 = arith.truncf %20 : vector<256x128xf32> to vector<256x128xbf16>
      %c0_12 = arith.constant 0 : index
      %c0_13 = arith.constant 0 : index
      %22 = vector.load %arg5[%c0_12, %c0_13] : memref<128x128xbf16, #tpu.memory_space<vmem>>, vector<128x128xbf16>
      %cst_14 = arith.constant dense<0.000000e+00> : vector<256x128xf32>
      %23 = tpu.matmul %21, %22, %cst_14 {dimension_numbers = #tpu.dot_dimension_numbers<[1], [0], [0], [1], [0, 0, 1, 1], [], []>} : vector<256x128xbf16>, vector<128x128xbf16>, vector<256x128xf32> -> vector<256x128xf32>
      %24 = arith.truncf %23 : vector<256x128xf32> to vector<256x128xbf16>
      %c0_15 = arith.constant 0 : index
      %c0_16 = arith.constant 0 : index
      %25 = vector.load %arg6[%c0_15, %c0_16] : memref<256x128xbf16, #tpu.memory_space<vmem>>, vector<256x128xbf16>
      tpu.vector_store %arg6[%c0_15, %c0_16], %24 {strides = array<i32>} : memref<256x128xbf16, #tpu.memory_space<vmem>>, vector<256x128xbf16>,
    } else {
    }
    return
  }
  func.func @transform_0(%arg0: i32, %arg1: i32) -> (i32, i32) {
    %c0_i32 = arith.constant 0 : i32
    return %arg0, %arg1 : i32, i32
  }
  func.func @transform_1(%arg0: i32, %arg1: i32) -> (i32, i32) {
    %c0_i32 = arith.constant 0 : i32
    %c0_i32_0 = arith.constant 0 : i32
    %c0_i32_1 = arith.constant 0 : i32
    return %c0_i32, %c0_i32_0 : i32, i32
  }
  func.func @transform_2(%arg0: i32, %arg1: i32) -> (i32, i32) {
    %c0_i32 = arith.constant 0 : i32
    %c0_i32_0 = arith.constant 0 : i32
    %c0_i32_1 = arith.constant 0 : i32
    return %c0_i32, %c0_i32_0 : i32, i32
  }
  func.func @transform_3(%arg0: i32, %arg1: i32) -> (i32, i32) {
    %c0_i32 = arith.constant 0 : i32
    %c0_i32_0 = arith.constant 0 : i32
    %c0_i32_1 = arith.constant 0 : i32
    return %c0_i32, %c0_i32_0 : i32, i32
  }
  func.func @transform_4(%arg0: i32, %arg1: i32) -> (i32, i32) {
    %c0_i32 = arith.constant 0 : i32
    %c0_i32_0 = arith.constant 0 : i32
    return %arg0, %c0_i32 : i32, i32
  }
}

module attributes {stable_mosaic.version = 11 : i64} {
  func.func @transform_kernel(%arg0: i32, %arg1: memref<256x32xbf16, #tpu.memory_space<vmem>>, %arg2: memref<32x128xbf16, #tpu.memory_space<vmem>>, %arg3: memref<256x128xbf16, #tpu.memory_space<vmem>>) attributes {dimension_semantics = [#tpu.dimension_semantics<parallel>], iteration_bounds = array<i64: 1>, scalar_prefetch = 0 : i64, scratch_operands = 0 : i64, tpu.core_type = #tpu.core_type<tc>, window_params = [{transform_indices = @transform_0, window_bounds = array<i64: 256, 32>}, {pipeline_mode = #tpu.pipeline_mode<synchronous>, transform_indices = @transform_1, window_bounds = array<i64: 32, 128>}, {transform_indices = @transform_2, window_bounds = array<i64: 256, 128>}]} {
    %c0 = arith.constant 0 : index
    %c0_0 = arith.constant 0 : index
    %0 = vector.load %arg1[%c0, %c0_0] : memref<256x32xbf16, #tpu.memory_space<vmem>>, vector<256x32xbf16>
    %c0_1 = arith.constant 0 : index
    %c0_2 = arith.constant 0 : index
    %1 = vector.load %arg2[%c0_1, %c0_2] : memref<32x128xbf16, #tpu.memory_space<vmem>>, vector<32x128xbf16>
    %cst = arith.constant dense<0.000000e+00> : vector<256x128xf32>
    %2 = tpu.matmul %0, %1, %cst {dimension_numbers = #tpu.dot_dimension_numbers<[1], [0], [0], [1], [0, 0, 1, 1], [], []>} : vector<256x32xbf16>, vector<32x128xbf16>, vector<256x128xf32> -> vector<256x128xf32>
    %3 = arith.truncf %2 : vector<256x128xf32> to vector<256x128xbf16>
    %c0_3 = arith.constant 0 : index
    %c0_4 = arith.constant 0 : index
    %4 = vector.load %arg3[%c0_3, %c0_4] : memref<256x128xbf16, #tpu.memory_space<vmem>>, vector<256x128xbf16>
    tpu.vector_store %arg3[%c0_3, %c0_4], %3 {strides = array<i32>} : memref<256x128xbf16, #tpu.memory_space<vmem>>, vector<256x128xbf16>,
    return
  }
  func.func @transform_0(%arg0: i32) -> (i32, i32) {
    %c0_i32 = arith.constant 0 : i32
    %c0_i32_0 = arith.constant 0 : i32
    return %arg0, %c0_i32 : i32, i32
  }
  func.func @transform_1(%arg0: i32) -> (i32, i32) {
    %c0_i32 = arith.constant 0 : i32
    %c0_i32_0 = arith.constant 0 : i32
    %c0_i32_1 = arith.constant 0 : i32
    return %c0_i32, %c0_i32_0 : i32, i32
  }
  func.func @transform_2(%arg0: i32) -> (i32, i32) {
    %c0_i32 = arith.constant 0 : i32
    %c0_i32_0 = arith.constant 0 : i32
    return %arg0, %c0_i32 : i32, i32
  }
}

module attributes {stable_mosaic.version = 11 : i64} {
  func.func @kernel(%arg0: i32, %arg1: i32, %arg2: memref<256x256xbf16, #tpu.memory_space<vmem>>, %arg3: memref<256x128xbf16, #tpu.memory_space<vmem>>, %arg4: memref<1x128xf32, #tpu.memory_space<vmem>>, %arg5: memref<256x128xf32, #tpu.memory_space<vmem>>, %arg6: memref<256x128xf32, #tpu.memory_space<vmem>>) attributes {dimension_semantics = [#tpu.dimension_semantics<parallel>, #tpu.dimension_semantics<arbitrary>], iteration_bounds = array<i64: 1, 1>, scalar_prefetch = 0 : i64, scratch_operands = 1 : i64, tpu.core_type = #tpu.core_type<tc>, window_params = [{transform_indices = @transform_0, window_bounds = array<i64: 256, 256>}, {pipeline_mode = #tpu.pipeline_mode<synchronous>, transform_indices = @transform_1, window_bounds = array<i64: 256, 128>}, {pipeline_mode = #tpu.pipeline_mode<synchronous>, transform_indices = @transform_2, window_bounds = array<i64: 1, 128>}, {transform_indices = @transform_3, window_bounds = array<i64: 256, 128>}]} {
    %c256_i32 = arith.constant 256 : i32
    %0 = arith.muli %arg1, %c256_i32 : i32
    %1 = tpu.assume_multiple %0, 256 : i32
    %2 = arith.index_cast %1 : i32 to index
    %c0 = arith.constant 0 : index
    %3 = vector.load %arg3[%2, %c0] : memref<256x128xbf16, #tpu.memory_space<vmem>>, vector<256x128xbf16>
    %c0_0 = arith.constant 0 : index
    %c0_1 = arith.constant 0 : index
    %4 = vector.load %arg2[%c0_0, %c0_1] : memref<256x256xbf16, #tpu.memory_space<vmem>>, vector<256x256xbf16>
    %cst = arith.constant dense<0.000000e+00> : vector<256x128xf32>
    %5 = tpu.matmul %4, %3, %cst {dimension_numbers = #tpu.dot_dimension_numbers<[1], [0], [0], [1], [0, 0, 1, 1], [], []>} : vector<256x256xbf16>, vector<256x128xbf16>, vector<256x128xf32> -> vector<256x128xf32>
    %c0_i32 = arith.constant 0 : i32
    %6 = arith.cmpi eq, %arg1, %c0_i32 : i32
    %7 = arith.extui %6 : i1 to i32
    %c0_i32_2 = arith.constant 0 : i32
    %8 = arith.cmpi ne, %7, %c0_i32_2 : i32
    scf.if %8 {
      %c0_7 = arith.constant 0 : index
      %c0_8 = arith.constant 0 : index
      %15 = vector.load %arg6[%c0_7, %c0_8] : memref<256x128xf32, #tpu.memory_space<vmem>>, vector<256x128xf32>
      tpu.vector_store %arg6[%c0_7, %c0_8], %5 {strides = array<i32>} : memref<256x128xf32, #tpu.memory_space<vmem>>, vector<256x128xf32>,
    } else {
    }
    %c0_i32_3 = arith.constant 0 : i32
    %9 = arith.cmpi ne, %arg1, %c0_i32_3 : i32
    %10 = arith.extui %9 : i1 to i32
    %c0_i32_4 = arith.constant 0 : i32
    %11 = arith.cmpi ne, %10, %c0_i32_4 : i32
    scf.if %11 {
      %c0_7 = arith.constant 0 : index
      %c0_8 = arith.constant 0 : index
      %15 = vector.load %arg6[%c0_7, %c0_8] : memref<256x128xf32, #tpu.memory_space<vmem>>, vector<256x128xf32>
      %16 = arith.addf %15, %5 : vector<256x128xf32>
      %c0_9 = arith.constant 0 : index
      %c0_10 = arith.constant 0 : index
      %17 = vector.load %arg6[%c0_9, %c0_10] : memref<256x128xf32, #tpu.memory_space<vmem>>, vector<256x128xf32>
      tpu.vector_store %arg6[%c0_9, %c0_10], %16 {strides = array<i32>} : memref<256x128xf32, #tpu.memory_space<vmem>>, vector<256x128xf32>,
    } else {
    }
    %c0_i32_5 = arith.constant 0 : i32
    %12 = arith.cmpi eq, %arg1, %c0_i32_5 : i32
    %13 = arith.extui %12 : i1 to i32
    %c0_i32_6 = arith.constant 0 : i32
    %14 = arith.cmpi ne, %13, %c0_i32_6 : i32
    scf.if %14 {
      %c0_7 = arith.constant 0 : index
      %c0_8 = arith.constant 0 : index
      %15 = vector.load %arg6[%c0_7, %c0_8] : memref<256x128xf32, #tpu.memory_space<vmem>>, vector<256x128xf32>
      %c0_9 = arith.constant 0 : index
      %c0_10 = arith.constant 0 : index
      %16 = vector.load %arg4[%c0_9, %c0_10] : memref<1x128xf32, #tpu.memory_space<vmem>>, vector<1x128xf32>
      %17 = vector.broadcast %16 : vector<1x128xf32> to vector<256x128xf32>
      %18 = arith.addf %15, %17 : vector<256x128xf32>
      %19 = tpu.iota {dimensions = array<i32: 1>} : vector<256x128xi32>
      %c8_i32 = arith.constant 8 : i32
      %20 = vector.broadcast %c8_i32 : i32 to vector<256x128xi32>
      %21 = arith.cmpi slt, %19, %20 : vector<256x128xi32>
      %cst_11 = arith.constant 0xFF800000 : f32
      %22 = vector.broadcast %cst_11 : f32 to vector<256x128xf32>
      %23 = arith.select %21, %18, %22 : vector<256x128xi1>, vector<256x128xf32>
      %cst_12 = arith.constant dense<0xFF800000> : vector<256xf32>
      %24 = vector.multi_reduction <maximumf>, %23, %cst_12 [1] : vector<256x128xf32> to vector<256xf32>
      %25 = vector.shape_cast %24 : vector<256xf32> to vector<256x1xf32>
      %26 = vector.broadcast %25 : vector<256x1xf32> to vector<256x128xf32>
      %27 = arith.subf %23, %26 : vector<256x128xf32>
      %28 = math.exp %27 : vector<256x128xf32>
      %cst_13 = arith.constant 0.000000e+00 : f32
      %29 = vector.broadcast %cst_13 : f32 to vector<256x128xf32>
      %30 = arith.select %21, %28, %29 : vector<256x128xi1>, vector<256x128xf32>
      %cst_14 = arith.constant dense<0.000000e+00> : vector<256xf32>
      %31 = vector.multi_reduction <add>, %30, %cst_14 [1] : vector<256x128xf32> to vector<256xf32>
      %32 = vector.shape_cast %31 : vector<256xf32> to vector<256x1xf32>
      %33 = math.log %32 : vector<256x1xf32>
      %34 = vector.broadcast %33 : vector<256x1xf32> to vector<256x128xf32>
      %35 = arith.subf %27, %34 : vector<256x128xf32>
      %cst_15 = arith.constant 0.000000e+00 : f32
      %36 = vector.broadcast %cst_15 : f32 to vector<256x128xf32>
      %37 = arith.select %21, %35, %36 : vector<256x128xi1>, vector<256x128xf32>
      %c0_16 = arith.constant 0 : index
      %c0_17 = arith.constant 0 : index
      %38 = vector.load %arg5[%c0_16, %c0_17] : memref<256x128xf32, #tpu.memory_space<vmem>>, vector<256x128xf32>
      tpu.vector_store %arg5[%c0_16, %c0_17], %37 {strides = array<i32>} : memref<256x128xf32, #tpu.memory_space<vmem>>, vector<256x128xf32>,
    } else {
    }
    return
  }
  func.func @transform_0(%arg0: i32, %arg1: i32) -> (i32, i32) {
    %c0_i32 = arith.constant 0 : i32
    return %arg0, %arg1 : i32, i32
  }
  func.func @transform_1(%arg0: i32, %arg1: i32) -> (i32, i32) {
    %c0_i32 = arith.constant 0 : i32
    %c0_i32_0 = arith.constant 0 : i32
    %c0_i32_1 = arith.constant 0 : i32
    return %c0_i32, %c0_i32_0 : i32, i32
  }
  func.func @transform_2(%arg0: i32, %arg1: i32) -> (i32, i32) {
    %c0_i32 = arith.constant 0 : i32
    %c0_i32_0 = arith.constant 0 : i32
    %c0_i32_1 = arith.constant 0 : i32
    return %c0_i32, %c0_i32_0 : i32, i32
  }
  func.func @transform_3(%arg0: i32, %arg1: i32) -> (i32, i32) {
    %c0_i32 = arith.constant 0 : i32
    %c0_i32_0 = arith.constant 0 : i32
    return %arg0, %c0_i32 : i32, i32
  }
}

</mosaic_0001>

<bundles_post_ra>
// kernel: simple_gnn_forward.3
= control target key start
LH: loop header
LB: loop body
LE: loop exit
PB: predicated region body
PF: predicated region fallthrough
CT: control target
= control target key end

     0   :  { %vm140_vm0 = vcmask 261120   ;;  %s916_s1 = inlined_call_operand.vmem [shape: bf16[32,128], index: 1, kind: input, shape index: {}]   ;;  %s917_s0 = inlined_call_operand.vmem [shape: bf16[256,32], index: 0, kind: input, shape index: {}]   ;;  %s918_s2 = inlined_call_operand.vmem [shape: bf16[256,128], index: 2, kind: output, shape index: {}]  }
   0x1   :  { %v765_v0 = vld [vmem:[%s916_s1] sm:$0xff]   ;;  %v766_v1 = vld [vmem:[%s916_s1 + $0x8] sm:$0xff]   ;;  %v771_v6 = vld [vmem:[%s917_s0 + $0x10] sm:$0xff]  }
   0x2   :  { %725 = vmatprep.subr.bf16.mxu0 %v765_v0  ;;  %761 = vmatprep.subr.bf16.mxu1 %v765_v0  ;;  %v767_v2 = vld [vmem:[%s917_s0] sm:$0xff]   ;;  %v769_v4 = vld [vmem:[%s917_s0 + $0x8] sm:$0xff]   ;;  %v772_v7 = vld [vmem:[%s917_s0 + $0x50] sm:$0xff]  }
   0x3   :  { %726 = vmatpush3.bf16.msra.mxu0 %v765_v0  ;;  %763 = vmatpush3.bf16.msra.mxu1 %v765_v0  ;;  %v768_v3 = vld [vmem:[%s917_s0 + $0x40] sm:$0xff]   ;;  %v770_v5 = vld [vmem:[%s917_s0 + $0x48] sm:$0xff]   ;;  %v773_v8 = vld [vmem:[%s917_s0 + $0x18] sm:$0xff]  }
   0x4   :  { %727 = vmatprep.subr.bf16.mxu0 %v766_v1  ;;  %762 = vmatprep.subr.bf16.mxu1 %v766_v1  ;;  %v774_v9 = vld [vmem:[%s917_s0 + $0x58] sm:$0xff]   ;;  %v775_v10 = vld [vmem:[%s917_s0 + $0x20] sm:$0xff]   ;;  %v777_v12 = vld [vmem:[%s917_s0 + $0x28] sm:$0xff]  }
   0x5   :  { %729 = vmatprep.mubr.msk.bf16.mxu0 %vm140_vm0, %v767_v2  ;;  %745 = vmatprep.mubr.msk.bf16.mxu1 %vm140_vm0, %v768_v3  ;;  %v776_v11 = vld [vmem:[%s917_s0 + $0x60] sm:$0xff]   ;;  %v778_v13 = vld [vmem:[%s917_s0 + $0x68] sm:$0xff]   ;;  %v779_v14 = vld [vmem:[%s917_s0 + $0x30] sm:$0xff]  }
   0x6   :  { %v780_v15 = vld [vmem:[%s917_s0 + $0x70] sm:$0xff]   ;;  %v781_v16 = vld [vmem:[%s917_s0 + $0x38] sm:$0xff]  }
   0x7   :  { %728 = vmatpush3.bf16.msra.mxu0 %v766_v1  ;;  %764 = vmatpush3.bf16.msra.mxu1 %v766_v1  ;;  %v782_v17 = vld [vmem:[%s917_s0 + $0x78] sm:$0xff]  }
   0xa   :  { %730 = vmatmul.mubr.msk.bf16.vlgmr.msra.gmra.mrb[0].mxu0 %vm140_vm0, %v769_v4  ;;  %746 = vmatmul.mubr.msk.bf16.vlgmr.msra.gmra.mrb[0].mxu1 %vm140_vm0, %v770_v5 }
   0xb   :  { %733 = vmatprep.mubr.msk.bf16.mxu0 %vm140_vm0, %v771_v6  ;;  %749 = vmatprep.mubr.msk.bf16.mxu1 %vm140_vm0, %v772_v7 }
  0x12   :  { %734 = vmatmul.mubr.msk.bf16.gmra.mrb[4].mxu0 %vm140_vm0, %v773_v8  ;;  %750 = vmatmul.mubr.msk.bf16.gmra.mrb[4].mxu1 %vm140_vm0, %v774_v9 }
  0x13   :  { %737 = vmatprep.mubr.msk.bf16.mxu0 %vm140_vm0, %v775_v10  ;;  %753 = vmatprep.mubr.msk.bf16.mxu1 %vm140_vm0, %v776_v11 }
  0x1a   :  { %738 = vmatmul.mubr.msk.bf16.gmra.mrb[8].mxu0 %vm140_vm0, %v777_v12  ;;  %754 = vmatmul.mubr.msk.bf16.gmra.mrb[8].mxu1 %vm140_vm0, %v778_v13 }
  0x1b   :  { %741 = vmatprep.mubr.msk.bf16.mxu0 %vm140_vm0, %v779_v14  ;;  %757 = vmatprep.mubr.msk.bf16.mxu1 %vm140_vm0, %v780_v15 }
  0x22   :  { %742 = vmatmul.mubr.msk.bf16.gmra.mrb[12].mxu0 %vm140_vm0, %v781_v16  ;;  %758 = vmatmul.mubr.msk.bf16.gmra.mrb[12].mxu1 %vm140_vm0, %v782_v17 }
  0xdd   :  { %v731_v18 = vpop.f32.mrb[0].mxu0  ;;  %v747_v19 = vpop.f32.mrb[0].mxu1 }
  0xde   :  { %v223_v20 = vpop.f32.mrb[1].mxu0  ;;  %v287_v21 = vpop.f32.mrb[1].mxu1 }
  0xdf   :  { %v732_v22 = vpop.f32.mrb[2].mxu0  ;;  %v748_v23 = vpop.f32.mrb[2].mxu1 }
  0xe0   :  { %v620_v24 = vpack.c.bf16 %v732_v22, %v731_v18  ;;  %v660_v25 = vpack.c.bf16 %v748_v23, %v747_v19  ;;  %v226_v26 = vpop.f32.mrb[3].mxu0  ;;  %v290_v27 = vpop.f32.mrb[3].mxu1 }
  0xe1   :  { %v615_v28 = vpack.c.bf16 %v226_v26, %v223_v20  ;;  %v655_v29 = vpack.c.bf16 %v290_v27, %v287_v21 }
  0xe2   :  { %692 = vst [vmem:[%s918_s2 + $0x8] sm:$0xff] %v620_v24   ;;  %700 = vst [vmem:[%s918_s2 + $0x48] sm:$0xff] %v660_v25  }
  0xe3   :  { %616 = vst [vmem:[%s918_s2] sm:$0xff] %v615_v28   ;;  %699 = vst [vmem:[%s918_s2 + $0x40] sm:$0xff] %v655_v29  }
  0xe5   :  { %v735_v30 = vpop.f32.mrb[4].mxu0  ;;  %v751_v31 = vpop.f32.mrb[4].mxu1 }
  0xe6   :  { %v239_v32 = vpop.f32.mrb[5].mxu0  ;;  %v303_v33 = vpop.f32.mrb[5].mxu1 }
  0xe7   :  { %v736_v34 = vpop.f32.mrb[6].mxu0  ;;  %v752_v35 = vpop.f32.mrb[6].mxu1 }
  0xe8   :  { %v630_v36 = vpack.c.bf16 %v736_v34, %v735_v30  ;;  %v670_v37 = vpack.c.bf16 %v752_v35, %v751_v31  ;;  %v242_v38 = vpop.f32.mrb[7].mxu0  ;;  %v306_v39 = vpop.f32.mrb[7].mxu1 }
  0xe9   :  { %v625_v40 = vpack.c.bf16 %v242_v38, %v239_v32  ;;  %v665_v41 = vpack.c.bf16 %v306_v39, %v303_v33 }
  0xea   :  { %694 = vst [vmem:[%s918_s2 + $0x18] sm:$0xff] %v630_v36   ;;  %702 = vst [vmem:[%s918_s2 + $0x58] sm:$0xff] %v670_v37  }
  0xeb   :  { %693 = vst [vmem:[%s918_s2 + $0x10] sm:$0xff] %v625_v40   ;;  %701 = vst [vmem:[%s918_s2 + $0x50] sm:$0xff] %v665_v41  }
  0xed   :  { %v739_v42 = vpop.f32.mrb[8].mxu0  ;;  %v755_v43 = vpop.f32.mrb[8].mxu1 }
  0xee   :  { %v255_v44 = vpop.f32.mrb[9].mxu0  ;;  %v319_v45 = vpop.f32.mrb[9].mxu1 }
  0xef   :  { %v740_v46 = vpop.f32.mrb[10].mxu0  ;;  %v756_v47 = vpop.f32.mrb[10].mxu1 }
  0xf0   :  { %v640_v48 = vpack.c.bf16 %v740_v46, %v739_v42  ;;  %v680_v49 = vpack.c.bf16 %v756_v47, %v755_v43  ;;  %v258_v50 = vpop.f32.mrb[11].mxu0  ;;  %v322_v51 = vpop.f32.mrb[11].mxu1 }
  0xf1   :  { %v635_v52 = vpack.c.bf16 %v258_v50, %v255_v44  ;;  %v675_v53 = vpack.c.bf16 %v322_v51, %v319_v45 }
  0xf2   :  { %696 = vst [vmem:[%s918_s2 + $0x28] sm:$0xff] %v640_v48   ;;  %704 = vst [vmem:[%s918_s2 + $0x68] sm:$0xff] %v680_v49  }
  0xf3   :  { %695 = vst [vmem:[%s918_s2 + $0x20] sm:$0xff] %v635_v52   ;;  %703 = vst [vmem:[%s918_s2 + $0x60] sm:$0xff] %v675_v53  }
  0xf5   :  { %v743_v54 = vpop.f32.mrb[12].mxu0  ;;  %v759_v55 = vpop.f32.mrb[12].mxu1 }
  0xf6   :  { %v271_v56 = vpop.f32.mrb[13].mxu0  ;;  %v335_v57 = vpop.f32.mrb[13].mxu1 }
  0xf7   :  { %v744_v58 = vpop.f32.mrb[14].mxu0  ;;  %v760_v59 = vpop.f32.mrb[14].mxu1 }
  0xf8   :  { %v650_v60 = vpack.c.bf16 %v744_v58, %v743_v54  ;;  %v690_v61 = vpack.c.bf16 %v760_v59, %v759_v55  ;;  %v274_v62 = vpop.f32.mrb[15].mxu0  ;;  %v338_v63 = vpop.f32.mrb[15].mxu1 }
  0xf9   :  { %v645_v0 = vpack.c.bf16 %v274_v62, %v271_v56  ;;  %v685_v1 = vpack.c.bf16 %v338_v63, %v335_v57 }
  0xfa   :  { %698 = vst [vmem:[%s918_s2 + $0x38] sm:$0xff] %v650_v60   ;;  %706 = vst [vmem:[%s918_s2 + $0x78] sm:$0xff] %v690_v61  }
  0xfb   :  { %697 = vst [vmem:[%s918_s2 + $0x30] sm:$0xff] %v645_v0   ;;  %705 = vst [vmem:[%s918_s2 + $0x70] sm:$0xff] %v685_v1  }

// kernel: simple_gnn_forward.4
= control target key start
LH: loop header
LB: loop body
LE: loop exit
PB: predicated region body
PF: predicated region fallthrough
CT: control target
= control target key end

     0   :  { %s1931_s1 = inlined_call_operand.vmem [shape: bf16[256,128], index: 1, kind: input, shape index: {}]   ;;  %s1932_s0 = inlined_call_operand.vmem [shape: bf16[256,256], index: 0, kind: input, shape index: {}]   ;;  %s1933_s3 = inlined_call_operand.vmem [shape: bf16[128,128], index: 3, kind: input, shape index: {}]   ;;  %s1934_s2 = inlined_call_operand.vmem [shape: f32[1,128], index: 2, kind: input, shape index: {}]   ;;  %s1935_s4 = inlined_call_operand.vmem [shape: bf16[256,128], index: 4, kind: output, shape index: {}]  }
   0x1   :  { %v1569_v0 = vld [vmem:[%s1931_s1 + $0x40] sm:$0xff]   ;;  %v1571_v2 = vld [vmem:[%s1931_s1 + $0x48] sm:$0xff]   ;;  %v1573_v4 = vld [vmem:[%s1931_s1 + $0x50] sm:$0xff]  }
   0x2   :  { %v1570_v1 = vld [vmem:[%s1931_s1] sm:$0xff]   ;;  %1369 = vmatprep.subr.bf16.mxu0 %v1569_v0  ;;  %1553 = vmatprep.subr.bf16.mxu1 %v1569_v0  ;;  %v1572_v3 = vld [vmem:[%s1931_s1 + $0x8] sm:$0xff]   ;;  %v1574_v5 = vld [vmem:[%s1931_s1 + $0x10] sm:$0xff]  }
   0x3   :  { %1370 = vmatpush3.bf16.msra.mxu0 %v1570_v1  ;;  %1561 = vmatpush3.bf16.msra.mxu1 %v1570_v1  ;;  %v1575_v6 = vld [vmem:[%s1931_s1 + $0x58] sm:$0xff]   ;;  %v1577_v8 = vld [vmem:[%s1931_s1 + $0x60] sm:$0xff]   ;;  %v1579_v10 = vld [vmem:[%s1931_s1 + $0x68] sm:$0xff]  }
   0x4   :  { %1371 = vmatprep.subr.bf16.mxu0 %v1571_v2  ;;  %1554 = vmatprep.subr.bf16.mxu1 %v1571_v2  ;;  %v1576_v7 = vld [vmem:[%s1931_s1 + $0x18] sm:$0xff]   ;;  %v1578_v9 = vld [vmem:[%s1931_s1 + $0x20] sm:$0xff]   ;;  %v1580_v12 = vld [vmem:[%s1931_s1 + $0x28] sm:$0xff]  }
   0x5   :  { %v1587_v11 = vld [vmem:[%s1932_s0 + $0x4] ss:$8 sps:$4 sm:$0xff]   ;;  %v1581_v13 = vld [vmem:[%s1931_s1 + $0x70] sm:$0xff]   ;;  %v1583_v15 = vld [vmem:[%s1931_s1 + $0x78] sm:$0xff]  }
   0x6   :  { %375 = vmatprep.mubr.bf16.mxu0 %v1587_v11  ;;  %v1582_v14 = vld [vmem:[%s1931_s1 + $0x30] sm:$0xff]   ;;  %v1584_v16 = vld [vmem:[%s1931_s1 + $0x38] sm:$0xff]   ;;  %v1585_v17 = vld [vmem:[%s1932_s0] ss:$8 sps:$4 sm:$0xff]  }
   0x7   :  { %1372 = vmatpush3.bf16.msra.mxu0 %v1572_v3  ;;  %1562 = vmatpush3.bf16.msra.mxu1 %v1572_v3  ;;  %v1617_v18 = vld [vmem:[%s1932_s0 + $0xc4] ss:$8 sps:$4 sm:$0xff]   ;;  %v1588_v19 = vld [vmem:[%s1932_s0 + $0x14] ss:$8 sps:$4 sm:$0xff]   ;;  %v1615_v20 = vld [vmem:[%s1932_s0 + $0xc0] ss:$8 sps:$4 sm:$0xff]  }
   0x8   :  { %1373 = vmatprep.subr.bf16.mxu0 %v1573_v4  ;;  %1555 = vmatprep.subr.bf16.mxu1 %v1573_v4  ;;  %v1621_v21 = vld [vmem:[%s1932_s0 + $0xd4] ss:$8 sps:$4 sm:$0xff]   ;;  %v1590_v22 = vld [vmem:[%s1932_s0 + $0x10] ss:$8 sps:$4 sm:$0xff]   ;;  %v1591_v23 = vld [vmem:[%s1932_s0 + $0x24] ss:$8 sps:$4 sm:$0xff]  }
   0x9   :  { %471 = vmatprep.mubr.bf16.mxu1 %v1617_v18  ;;  %v1623_v24 = vld [vmem:[%s1932_s0 + $0xd0] ss:$8 sps:$4 sm:$0xff]   ;;  %v1627_v25 = vld [vmem:[%s1932_s0 + $0xe4] ss:$8 sps:$4 sm:$0xff]   ;;  %v1593_v29 = vld [vmem:[%s1932_s0 + $0x20] ss:$8 sps:$4 sm:$0xff]  }
   0xa   :  { %v1633_v26 = vld [vmem:[%s1933_s3] sm:$0xff]   ;;  %v1634_v27 = vld [vmem:[%s1933_s3 + $0x8] sm:$0xff]   ;;  %v1635_v28 = vld [vmem:[%s1933_s3 + $0x10] sm:$0xff]  }
   0xb   :  { %1374 = vmatpush3.bf16.msra.mxu0 %v1574_v5  ;;  %1563 = vmatpush3.bf16.msra.mxu1 %v1574_v5  ;;  %v1594_v30 = vld [vmem:[%s1932_s0 + $0x34] ss:$8 sps:$4 sm:$0xff]   ;;  %v1629_v31 = vld [vmem:[%s1932_s0 + $0xe0] ss:$8 sps:$4 sm:$0xff]   ;;  %v1596_v33 = vld [vmem:[%s1932_s0 + $0x30] ss:$8 sps:$4 sm:$0xff]  }
   0xc   :  { %1375 = vmatprep.subr.bf16.mxu0 %v1575_v6  ;;  %1556 = vmatprep.subr.bf16.mxu1 %v1575_v6  ;;  %v1630_v32 = vld [vmem:[%s1932_s0 + $0xf4] ss:$8 sps:$4 sm:$0xff]   ;;  %v1597_v34 = vld [vmem:[%s1932_s0 + $0x44] ss:$8 sps:$4 sm:$0xff]   ;;  %v1632_v35 = vld [vmem:[%s1932_s0 + $0xf0] ss:$8 sps:$4 sm:$0xff]  }
   0xd   :  { %v1599_v36 = vld [vmem:[%s1932_s0 + $0x40] ss:$8 sps:$4 sm:$0xff]   ;;  %v1600_v37 = vld [vmem:[%s1932_s0 + $0x54] ss:$8 sps:$4 sm:$0xff]   ;;  %v1602_v38 = vld [vmem:[%s1932_s0 + $0x50] ss:$8 sps:$4 sm:$0xff]  }
   0xe   :  { %v1603_v39 = vld [vmem:[%s1932_s0 + $0x64] ss:$8 sps:$4 sm:$0xff]   ;;  %v1605_v40 = vld [vmem:[%s1932_s0 + $0x60] ss:$8 sps:$4 sm:$0xff]   ;;  %v1606_v41 = vld [vmem:[%s1932_s0 + $0x74] ss:$8 sps:$4 sm:$0xff]  }
   0xf   :  { %1376 = vmatpush3.bf16.msra.mxu0 %v1576_v7  ;;  %1564 = vmatpush3.bf16.msra.mxu1 %v1576_v7  ;;  %v1608_v42 = vld [vmem:[%s1932_s0 + $0x70] ss:$8 sps:$4 sm:$0xff]   ;;  %v1609_v43 = vld [vmem:[%s1932_s0 + $0x84] ss:$8 sps:$4 sm:$0xff]   ;;  %v1611_v44 = vld [vmem:[%s1932_s0 + $0x80] ss:$8 sps:$4 sm:$0xff]  }
  0x10   :  { %1377 = vmatprep.subr.bf16.mxu0 %v1577_v8  ;;  %1557 = vmatprep.subr.bf16.mxu1 %v1577_v8  ;;  %v1612_v45 = vld [vmem:[%s1932_s0 + $0x94] ss:$8 sps:$4 sm:$0xff]   ;;  %v1614_v46 = vld [vmem:[%s1932_s0 + $0x90] ss:$8 sps:$4 sm:$0xff]   ;;  %v1618_v47 = vld [vmem:[%s1932_s0 + $0xa4] ss:$8 sps:$4 sm:$0xff]  }
  0x11   :  { %v1620_v48 = vld [vmem:[%s1932_s0 + $0xa0] ss:$8 sps:$4 sm:$0xff]   ;;  %v1624_v49 = vld [vmem:[%s1932_s0 + $0xb4] ss:$8 sps:$4 sm:$0xff]   ;;  %v1626_v51 = vld [vmem:[%s1932_s0 + $0xb0] ss:$8 sps:$4 sm:$0xff]  }
  0x12   :  { %v1636_v50 = vld [vmem:[%s1933_s3 + $0x18] sm:$0xff]   ;;  %v1637_v52 = vld [vmem:[%s1933_s3 + $0x20] sm:$0xff]   ;;  %v1638_v53 = vld [vmem:[%s1933_s3 + $0x28] sm:$0xff]  }
  0x13   :  { %1378 = vmatpush3.bf16.msra.mxu0 %v1578_v9  ;;  %1565 = vmatpush3.bf16.msra.mxu1 %v1578_v9  ;;  %v1639_v54 = vld [vmem:[%s1933_s3 + $0x30] sm:$0xff]   ;;  %v1640_v55 = vld [vmem:[%s1933_s3 + $0x38] sm:$0xff]   ;;  %v1837_v58 = vld [vmem:[%s1934_s2] ss:$0 sm:$0xff] }
  0x14   :  { %1379 = vmatprep.subr.bf16.mxu0 %v1579_v10  ;;  %1558 = vmatprep.subr.bf16.mxu1 %v1579_v10 }
  0x17   :  { %1380 = vmatpush3.bf16.msra.mxu0 %v1580_v12  ;;  %1566 = vmatpush3.bf16.msra.mxu1 %v1580_v12 }
  0x18   :  { %1381 = vmatprep.subr.bf16.mxu0 %v1581_v13  ;;  %1559 = vmatprep.subr.bf16.mxu1 %v1581_v13 }
  0x1b   :  { %1382 = vmatpush3.bf16.msra.mxu0 %v1582_v14  ;;  %1567 = vmatpush3.bf16.msra.mxu1 %v1582_v14 }
  0x1c   :  { %1383 = vmatprep.subr.bf16.mxu0 %v1583_v15  ;;  %1560 = vmatprep.subr.bf16.mxu1 %v1583_v15 }
  0x1f   :  { %1384 = vmatpush3.bf16.msra.mxu0 %v1584_v16  ;;  %1568 = vmatpush3.bf16.msra.mxu1 %v1584_v16 }
  0x20   :  { %1505 = vmatprep.subr.bf16.mxu1 %v1633_v26 }
  0x22   :  { %376 = vmatmul.mubr.bf16.vlgmr.msra.gmra.mrb[0].mxu0 %v1585_v17  ;;  %472 = vmatmul.mubr.bf16.vlgmr.msra.gmra.mrb[0].mxu1 %v1615_v20 }
  0x23   :  { %383 = vmatprep.mubr.bf16.mxu0 %v1588_v19  ;;  %479 = vmatprep.mubr.bf16.mxu1 %v1621_v21 }
  0x24   :  { %1506 = vmatpush3.bf16.msra.mxu1 %v1633_v26 }
  0x25   :  { %1507 = vmatprep.subr.bf16.mxu1 %v1634_v27 }
  0x28   :  { %1508 = vmatpush3.bf16.msra.mxu1 %v1634_v27 }
  0x29   :  { %1509 = vmatprep.subr.bf16.mxu1 %v1635_v28 }
  0x2a   :  { %384 = vmatmul.mubr.bf16.gmra.mrb[4].mxu0 %v1590_v22  ;;  %480 = vmatmul.mubr.bf16.gmra.mrb[4].mxu1 %v1623_v24 }
  0x2b   :  { %391 = vmatprep.mubr.bf16.mxu0 %v1591_v23  ;;  %487 = vmatprep.mubr.bf16.mxu1 %v1627_v25 }
  0x2c   :  { %1510 = vmatpush3.bf16.msra.mxu1 %v1635_v28 }
  0x2d   :  { %1511 = vmatprep.subr.bf16.mxu1 %v1636_v50 }
  0x30   :  { %1512 = vmatpush3.bf16.msra.mxu1 %v1636_v50 }
  0x31   :  { %1513 = vmatprep.subr.bf16.mxu1 %v1637_v52 }
  0x32   :  { %392 = vmatmul.mubr.bf16.gmra.mrb[8].mxu0 %v1593_v29  ;;  %488 = vmatmul.mubr.bf16.gmra.mrb[8].mxu1 %v1629_v31 }
  0x33   :  { %399 = vmatprep.mubr.bf16.mxu0 %v1594_v30  ;;  %495 = vmatprep.mubr.bf16.mxu1 %v1630_v32 }
  0x34   :  { %1514 = vmatpush3.bf16.msra.mxu1 %v1637_v52 }
  0x35   :  { %1515 = vmatprep.subr.bf16.mxu1 %v1638_v53 }
  0x38   :  { %1516 = vmatpush3.bf16.msra.mxu1 %v1638_v53 }
  0x39   :  { %1517 = vmatprep.subr.bf16.mxu1 %v1639_v54 }
  0x3a   :  { %400 = vmatmul.mubr.bf16.gmra.mrb[12].mxu0 %v1596_v33  ;;  %496 = vmatmul.mubr.bf16.gmra.mrb[12].mxu1 %v1632_v35 }
  0x3b   :  { %407 = vmatprep.mubr.bf16.mxu0 %v1597_v34 }
  0x3c   :  { %1518 = vmatpush3.bf16.msra.mxu1 %v1639_v54 }
  0x3d   :  { %1519 = vmatprep.subr.bf16.mxu1 %v1640_v55 }
  0x40   :  { %1520 = vmatpush3.bf16.msra.mxu1 %v1640_v55 }
  0x42   :  { %408 = vmatmul.mubr.bf16.gmra.mrb[16].mxu0 %v1599_v36 }
  0x43   :  { %415 = vmatprep.mubr.bf16.mxu0 %v1600_v37 }
  0x4a   :  { %416 = vmatmul.mubr.bf16.gmra.mrb[20].mxu0 %v1602_v38 }
  0x4b   :  { %423 = vmatprep.mubr.bf16.mxu0 %v1603_v39 }
  0x52   :  { %424 = vmatmul.mubr.bf16.gmra.mrb[24].mxu0 %v1605_v40 }
  0x53   :  { %431 = vmatprep.mubr.bf16.mxu0 %v1606_v41 }
  0x5a   :  { %432 = vmatmul.mubr.bf16.gmra.mrb[28].mxu0 %v1608_v42 }
  0x5b   :  { %439 = vmatprep.mubr.bf16.mxu0 %v1609_v43 }
  0x62   :  { %440 = vmatmul.mubr.bf16.gmra.mrb[32].mxu0 %v1611_v44 }
  0x63   :  { %447 = vmatprep.mubr.bf16.mxu0 %v1612_v45 }
  0x6a   :  { %448 = vmatmul.mubr.bf16.gmra.mrb[36].mxu0 %v1614_v46 }
  0x6b   :  { %455 = vmatprep.mubr.bf16.mxu0 %v1618_v47 }
  0x72   :  { %456 = vmatmul.mubr.bf16.gmra.mrb[40].mxu0 %v1620_v48 }
  0x73   :  { %463 = vmatprep.mubr.bf16.mxu0 %v1624_v49 }
  0x7a   :  { %464 = vmatmul.mubr.bf16.gmra.mrb[44].mxu0 %v1626_v51 }
  0xf5   :  { %v1385_v56 = vpop.f32.mrb[0].mxu0  ;;  %v1457_v59 = vpop.f32.mrb[0].mxu1 }
  0xf6   :  { %v1386_v57 = vpop.f32.mrb[1].mxu0  ;;  %v1458_v62 = vpop.f32.mrb[1].mxu1 }
  0xf7   :  { %v1387_v60 = vadd.f32 %v1386_v57, %v1385_v56  ;;  %v1388_v61 = vpop.f32.mrb[2].mxu0  ;;  %v1459_v0 = vadd.f32 %v1458_v62, %v1457_v59  ;;  %v1460_v1 = vpop.f32.mrb[2].mxu1 }
  0xf8   :  { %v1389_v63 = vpop.f32.mrb[3].mxu0  ;;  %v1461_v4 = vpop.f32.mrb[3].mxu1 }
  0xf9   :  { %v682_v2 = vadd.f32 %v1387_v60, %v1837_v58  ;;  %v1390_v3 = vadd.f32 %v1389_v63, %v1388_v61  ;;  %v706_v5 = vadd.f32 %v1459_v0, %v1837_v58  ;;  %v1462_v6 = vadd.f32 %v1461_v4, %v1460_v1 }
  0xfb   :  { %v683_v7 = vadd.f32 %v1390_v3, %v1837_v58  ;;  %v738_v8 = vmax.f32 %v706_v5, 0.0  ;;  %v707_v9 = vadd.f32 %v1462_v6, %v1837_v58  ;;  %v714_v10 = vmax.f32 %v682_v2, 0.0 }
  0xfd   :  { %v715_v11 = vmax.f32 %v683_v7, 0.0  ;;  %v1391_v12 = vpop.f32.mrb[4].mxu0  ;;  %v739_v14 = vmax.f32 %v707_v9, 0.0  ;;  %v1463_v15 = vpop.f32.mrb[4].mxu1 }
  0xfe   :  { %v1392_v13 = vpop.f32.mrb[5].mxu0  ;;  %v1464_v19 = vpop.f32.mrb[5].mxu1 }
  0xff   :  { %v1393_v16 = vadd.f32 %v1392_v13, %v1391_v12  ;;  %v1394_v17 = vpop.f32.mrb[6].mxu0  ;;  %v746_v18 = vpack.c.bf16 %v715_v11, %v714_v10  ;;  %v1465_v21 = vadd.f32 %v1464_v19, %v1463_v15  ;;  %v1466_v22 = vpop.f32.mrb[6].mxu1  ;;  %v1843_v23 = vpack.c.bf16 %v739_v14, %v738_v8 }
 0x100   :  { %v1395_v20 = vpop.f32.mrb[7].mxu0  ;;  %v1467_v26 = vpop.f32.mrb[7].mxu1 }
 0x101   :  { %v684_v24 = vadd.f32 %v1393_v16, %v1837_v58  ;;  %v1396_v25 = vadd.f32 %v1395_v20, %v1394_v17  ;;  %1521 = vmatprep.mubr.bf16.mxu1 %v746_v18  ;;  %v708_v27 = vadd.f32 %v1465_v21, %v1837_v58  ;;  %v1468_v28 = vadd.f32 %v1467_v26, %v1466_v22 }
 0x103   :  { %v685_v29 = vadd.f32 %v1396_v25, %v1837_v58  ;;  %v740_v30 = vmax.f32 %v708_v27, 0.0  ;;  %v709_v31 = vadd.f32 %v1468_v28, %v1837_v58  ;;  %v716_v32 = vmax.f32 %v684_v24, 0.0 }
 0x105   :  { %v717_v33 = vmax.f32 %v685_v29, 0.0  ;;  %v1397_v34 = vpop.f32.mrb[8].mxu0  ;;  %v741_v36 = vmax.f32 %v709_v31, 0.0  ;;  %v1469_v37 = vpop.f32.mrb[8].mxu1 }
 0x106   :  { %v1398_v35 = vpop.f32.mrb[9].mxu0  ;;  %v1470_v41 = vpop.f32.mrb[9].mxu1 }
 0x107   :  { %v747_v38 = vpack.c.bf16 %v717_v33, %v716_v32  ;;  %v1399_v39 = vadd.f32 %v1398_v35, %v1397_v34  ;;  %v1400_v40 = vpop.f32.mrb[10].mxu0  ;;  %v1471_v43 = vadd.f32 %v1470_v41, %v1469_v37  ;;  %v1472_v44 = vpop.f32.mrb[10].mxu1  ;;  %v1849_v45 = vpack.c.bf16 %v741_v36, %v740_v30 }
 0x108   :  { %v1401_v42 = vpop.f32.mrb[11].mxu0  ;;  %v1473_v48 = vpop.f32.mrb[11].mxu1 }
 0x109   :  { %v686_v46 = vadd.f32 %v1399_v39, %v1837_v58  ;;  %v1402_v47 = vadd.f32 %v1401_v42, %v1400_v40  ;;  %1522 = vmatmul.mubr.bf16.vlgmr.msra.gmra.mrb[16].mxu1 %v747_v38  ;;  %v710_v49 = vadd.f32 %v1471_v43, %v1837_v58  ;;  %v1474_v50 = vadd.f32 %v1473_v48, %v1472_v44 }
 0x10b   :  { %v687_v51 = vadd.f32 %v1402_v47, %v1837_v58  ;;  %v742_v52 = vmax.f32 %v710_v49, 0.0  ;;  %v711_v53 = vadd.f32 %v1474_v50, %v1837_v58  ;;  %v718_v54 = vmax.f32 %v686_v46, 0.0 }
 0x10d   :  { %v719_v55 = vmax.f32 %v687_v51, 0.0  ;;  %v1403_v56 = vpop.f32.mrb[12].mxu0  ;;  %v743_v59 = vmax.f32 %v711_v53, 0.0  ;;  %v1475_v60 = vpop.f32.mrb[12].mxu1 }
 0x10e   :  { %v1404_v57 = vpop.f32.mrb[13].mxu0  ;;  %v1476_v0 = vpop.f32.mrb[13].mxu1 }
 0x10f   :  { %v1405_v61 = vadd.f32 %v1404_v57, %v1403_v56  ;;  %v1406_v62 = vpop.f32.mrb[14].mxu0  ;;  %v748_v63 = vpack.c.bf16 %v719_v55, %v718_v54  ;;  %v1477_v2 = vadd.f32 %v1476_v0, %v1475_v60  ;;  %v1478_v3 = vpop.f32.mrb[14].mxu1  ;;  %v1855_v4 = vpack.c.bf16 %v743_v59, %v742_v52 }
 0x110   :  { %v1407_v1 = vpop.f32.mrb[15].mxu0  ;;  %v1479_v7 = vpop.f32.mrb[15].mxu1 }
 0x111   :  { %v688_v5 = vadd.f32 %v1405_v61, %v1837_v58  ;;  %v1408_v6 = vadd.f32 %v1407_v1, %v1406_v62  ;;  %1525 = vmatprep.mubr.bf16.mxu1 %v748_v63  ;;  %v712_v8 = vadd.f32 %v1477_v2, %v1837_v58  ;;  %v1480_v9 = vadd.f32 %v1479_v7, %v1478_v3 }
 0x113   :  { %v689_v10 = vadd.f32 %v1408_v6, %v1837_v58  ;;  %v744_v11 = vmax.f32 %v712_v8, 0.0  ;;  %v713_v12 = vadd.f32 %v1480_v9, %v1837_v58  ;;  %v720_v13 = vmax.f32 %v688_v5, 0.0 }
 0x115   :  { %v721_v14 = vmax.f32 %v689_v10, 0.0  ;;  %v1409_v15 = vpop.f32.mrb[16].mxu0  ;;  %v745_v17 = vmax.f32 %v713_v12, 0.0 }
 0x116   :  { %v1410_v16 = vpop.f32.mrb[17].mxu0 }
 0x117   :  { %v1411_v18 = vadd.f32 %v1410_v16, %v1409_v15  ;;  %v1412_v19 = vpop.f32.mrb[18].mxu0  ;;  %v749_v20 = vpack.c.bf16 %v721_v14, %v720_v13  ;;  %v1861_v22 = vpack.c.bf16 %v745_v17, %v744_v11 }
 0x118   :  { %v1413_v21 = vpop.f32.mrb[19].mxu0 }
 0x119   :  { %v690_v24 = vadd.f32 %v1411_v18, %v1837_v58  ;;  %v1414_v25 = vadd.f32 %v1413_v21, %v1412_v19  ;;  %1526 = vmatmul.mubr.bf16.gmra.mrb[20].mxu1 %v749_v20 }
 0x11b   :  { %v691_v26 = vadd.f32 %v1414_v25, %v1837_v58  ;;  %v722_v27 = vmax.f32 %v690_v24, 0.0 }
 0x11d   :  { %v723_v28 = vmax.f32 %v691_v26, 0.0  ;;  %v1415_v29 = vpop.f32.mrb[20].mxu0 }
 0x11e   :  { %v1416_v30 = vpop.f32.mrb[21].mxu0 }
 0x11f   :  { %v1417_v31 = vadd.f32 %v1416_v30, %v1415_v29  ;;  %v1418_v32 = vpop.f32.mrb[22].mxu0  ;;  %v750_v33 = vpack.c.bf16 %v723_v28, %v722_v27 }
 0x120   :  { %v1419_v34 = vpop.f32.mrb[23].mxu0 }
 0x121   :  { %v692_v35 = vadd.f32 %v1417_v31, %v1837_v58  ;;  %v1420_v36 = vadd.f32 %v1419_v34, %v1418_v32  ;;  %1529 = vmatprep.mubr.bf16.mxu1 %v750_v33 }
 0x123   :  { %v693_v37 = vadd.f32 %v1420_v36, %v1837_v58  ;;  %v724_v38 = vmax.f32 %v692_v35, 0.0 }
 0x125   :  { %v725_v39 = vmax.f32 %v693_v37, 0.0  ;;  %v1421_v40 = vpop.f32.mrb[24].mxu0 }
 0x126   :  { %v1422_v41 = vpop.f32.mrb[25].mxu0 }
 0x127   :  { %v1423_v42 = vadd.f32 %v1422_v41, %v1421_v40  ;;  %v1424_v43 = vpop.f32.mrb[26].mxu0  ;;  %v751_v44 = vpack.c.bf16 %v725_v39, %v724_v38 }
 0x128   :  { %v1425_v46 = vpop.f32.mrb[27].mxu0 }
 0x129   :  { %v694_v47 = vadd.f32 %v1423_v42, %v1837_v58  ;;  %v1426_v48 = vadd.f32 %v1425_v46, %v1424_v43  ;;  %1530 = vmatmul.mubr.bf16.gmra.mrb[24].mxu1 %v751_v44 }
 0x12b   :  { %v695_v49 = vadd.f32 %v1426_v48, %v1837_v58  ;;  %v726_v50 = vmax.f32 %v694_v47, 0.0 }
 0x12d   :  { %v727_v51 = vmax.f32 %v695_v49, 0.0  ;;  %v1427_v52 = vpop.f32.mrb[28].mxu0 }
 0x12e   :  { %v1428_v53 = vpop.f32.mrb[29].mxu0 }
 0x12f   :  { %v1429_v54 = vadd.f32 %v1428_v53, %v1427_v52  ;;  %v1430_v55 = vpop.f32.mrb[30].mxu0  ;;  %v752_v56 = vpack.c.bf16 %v727_v51, %v726_v50 }
 0x130   :  { %v1431_v57 = vpop.f32.mrb[31].mxu0 }
 0x131   :  { %v696_v59 = vadd.f32 %v1429_v54, %v1837_v58  ;;  %v1432_v60 = vadd.f32 %v1431_v57, %v1430_v55  ;;  %1533 = vmatprep.mubr.bf16.mxu1 %v752_v56 }
 0x133   :  { %v697_v61 = vadd.f32 %v1432_v60, %v1837_v58  ;;  %v728_v62 = vmax.f32 %v696_v59, 0.0 }
 0x135   :  { %v729_v63 = vmax.f32 %v697_v61, 0.0  ;;  %v1433_v0 = vpop.f32.mrb[32].mxu0 }
 0x136   :  { %v1434_v1 = vpop.f32.mrb[33].mxu0 }
 0x137   :  { %v1435_v2 = vadd.f32 %v1434_v1, %v1433_v0  ;;  %v1436_v3 = vpop.f32.mrb[34].mxu0  ;;  %v753_v5 = vpack.c.bf16 %v729_v63, %v728_v62 }
 0x138   :  { %v1437_v6 = vpop.f32.mrb[35].mxu0 }
 0x139   :  { %v698_v7 = vadd.f32 %v1435_v2, %v1837_v58  ;;  %v1438_v8 = vadd.f32 %v1437_v6, %v1436_v3  ;;  %1534 = vmatmul.mubr.bf16.gmra.mrb[28].mxu1 %v753_v5 }
 0x13b   :  { %v699_v9 = vadd.f32 %v1438_v8, %v1837_v58  ;;  %v730_v10 = vmax.f32 %v698_v7, 0.0 }
 0x13d   :  { %v731_v11 = vmax.f32 %v699_v9, 0.0  ;;  %v1439_v12 = vpop.f32.mrb[36].mxu0 }
 0x13e   :  { %v1440_v13 = vpop.f32.mrb[37].mxu0 }
 0x13f   :  { %v1441_v14 = vadd.f32 %v1440_v13, %v1439_v12  ;;  %v1442_v15 = vpop.f32.mrb[38].mxu0  ;;  %v754_v16 = vpack.c.bf16 %v731_v11, %v730_v10 }
 0x140   :  { %v1443_v17 = vpop.f32.mrb[39].mxu0 }
 0x141   :  { %v700_v18 = vadd.f32 %v1441_v14, %v1837_v58  ;;  %v1444_v19 = vadd.f32 %v1443_v17, %v1442_v15  ;;  %1537 = vmatprep.mubr.bf16.mxu1 %v754_v16 }
 0x143   :  { %v701_v20 = vadd.f32 %v1444_v19, %v1837_v58  ;;  %v732_v21 = vmax.f32 %v700_v18, 0.0 }
 0x145   :  { %v733_v24 = vmax.f32 %v701_v20, 0.0  ;;  %v1445_v25 = vpop.f32.mrb[40].mxu0 }
 0x146   :  { %v1446_v26 = vpop.f32.mrb[41].mxu0 }
 0x147   :  { %v1447_v27 = vadd.f32 %v1446_v26, %v1445_v25  ;;  %v1448_v28 = vpop.f32.mrb[42].mxu0  ;;  %v755_v29 = vpack.c.bf16 %v733_v24, %v732_v21 }
 0x148   :  { %v1449_v30 = vpop.f32.mrb[43].mxu0 }
 0x149   :  { %v702_v31 = vadd.f32 %v1447_v27, %v1837_v58  ;;  %v1450_v32 = vadd.f32 %v1449_v30, %v1448_v28  ;;  %1538 = vmatmul.mubr.bf16.gmra.mrb[32].mxu1 %v755_v29 }
 0x14b   :  { %v703_v33 = vadd.f32 %v1450_v32, %v1837_v58  ;;  %v734_v34 = vmax.f32 %v702_v31, 0.0 }
 0x14d   :  { %v735_v35 = vmax.f32 %v703_v33, 0.0  ;;  %v1451_v36 = vpop.f32.mrb[44].mxu0 }
 0x14e   :  { %v1452_v37 = vpop.f32.mrb[45].mxu0 }
 0x14f   :  { %v1453_v38 = vadd.f32 %v1452_v37, %v1451_v36  ;;  %v1454_v39 = vpop.f32.mrb[46].mxu0  ;;  %v756_v40 = vpack.c.bf16 %v735_v35, %v734_v34 }
 0x150   :  { %v1455_v41 = vpop.f32.mrb[47].mxu0 }
 0x151   :  { %v704_v42 = vadd.f32 %v1453_v38, %v1837_v58  ;;  %v1456_v43 = vadd.f32 %v1455_v41, %v1454_v39  ;;  %1541 = vmatprep.mubr.bf16.mxu1 %v756_v40 }
 0x153   :  { %v705_v44 = vadd.f32 %v1456_v43, %v1837_v58  ;;  %v736_v46 = vmax.f32 %v704_v42, 0.0 }
 0x155   :  { %v737_v47 = vmax.f32 %v705_v44, 0.0 }
 0x157   :  { %v757_v48 = vpack.c.bf16 %v737_v47, %v736_v46 }
 0x159   :  { %1542 = vmatmul.mubr.bf16.gmra.mrb[36].mxu1 %v757_v48 }
 0x15a   :  { %1545 = vmatprep.mubr.bf16.mxu1 %v1843_v23 }
 0x161   :  { %1546 = vmatmul.mubr.bf16.gmra.mrb[40].mxu1 %v1849_v45 }
 0x162   :  { %1549 = vmatprep.mubr.bf16.mxu1 %v1855_v4 }
 0x169   :  { %1550 = vmatmul.mubr.bf16.gmra.mrb[44].mxu1 %v1861_v22 }
 0x1dc   :  { %v1523_v49 = vpop.f32.mrb[16].mxu1 }
 0x1dd   :  { %v860_v50 = vpop.f32.mrb[17].mxu1 }
 0x1de   :  { %v1524_v51 = vpop.f32.mrb[18].mxu1 }
 0x1df   :  { %v1282_v52 = vpack.c.bf16 %v1524_v51, %v1523_v49  ;;  %v863_v53 = vpop.f32.mrb[19].mxu1 }
 0x1e0   :  { %v1277_v54 = vpack.c.bf16 %v863_v53, %v860_v50 }
 0x1e1   :  { %1354 = vst [vmem:[%s1935_s4 + $0x8] sm:$0xff] %v1282_v52  }
 0x1e2   :  { %1278 = vst [vmem:[%s1935_s4] sm:$0xff] %v1277_v54  }
 0x1ec   :  { %v1527_v58 = vpop.f32.mrb[20].mxu1 }
 0x1ed   :  { %v876_v23 = vpop.f32.mrb[21].mxu1 }
 0x1ee   :  { %v1528_v45 = vpop.f32.mrb[22].mxu1 }
 0x1ef   :  { %v1292_v4 = vpack.c.bf16 %v1528_v45, %v1527_v58  ;;  %v879_v55 = vpop.f32.mrb[23].mxu1 }
 0x1f0   :  { %v1287_v22 = vpack.c.bf16 %v879_v55, %v876_v23 }
 0x1f1   :  { %1356 = vst [vmem:[%s1935_s4 + $0x18] sm:$0xff] %v1292_v4  }
 0x1f2   :  { %1355 = vst [vmem:[%s1935_s4 + $0x10] sm:$0xff] %v1287_v22  }
 0x1fc   :  { %v1531_v56 = vpop.f32.mrb[24].mxu1 }
 0x1fd   :  { %v892_v57 = vpop.f32.mrb[25].mxu1 }
 0x1fe   :  { %v1532_v59 = vpop.f32.mrb[26].mxu1 }
 0x1ff   :  { %v1302_v60 = vpack.c.bf16 %v1532_v59, %v1531_v56  ;;  %v895_v61 = vpop.f32.mrb[27].mxu1 }
 0x200   :  { %v1297_v62 = vpack.c.bf16 %v895_v61, %v892_v57 }
 0x201   :  { %1358 = vst [vmem:[%s1935_s4 + $0x28] sm:$0xff] %v1302_v60  }
 0x202   :  { %1357 = vst [vmem:[%s1935_s4 + $0x20] sm:$0xff] %v1297_v62  }
 0x20c   :  { %v1535_v63 = vpop.f32.mrb[28].mxu1 }
 0x20d   :  { %v908_v0 = vpop.f32.mrb[29].mxu1 }
 0x20e   :  { %v1536_v1 = vpop.f32.mrb[30].mxu1 }
 0x20f   :  { %v1312_v2 = vpack.c.bf16 %v1536_v1, %v1535_v63  ;;  %v911_v3 = vpop.f32.mrb[31].mxu1 }
 0x210   :  { %v1307_v5 = vpack.c.bf16 %v911_v3, %v908_v0 }
 0x211   :  { %1360 = vst [vmem:[%s1935_s4 + $0x38] sm:$0xff] %v1312_v2  }
 0x212   :  { %1359 = vst [vmem:[%s1935_s4 + $0x30] sm:$0xff] %v1307_v5  }
 0x21c   :  { %v1539_v6 = vpop.f32.mrb[32].mxu1 }
 0x21d   :  { %v924_v7 = vpop.f32.mrb[33].mxu1 }
 0x21e   :  { %v1540_v8 = vpop.f32.mrb[34].mxu1 }
 0x21f   :  { %v1322_v9 = vpack.c.bf16 %v1540_v8, %v1539_v6  ;;  %v927_v10 = vpop.f32.mrb[35].mxu1 }
 0x220   :  { %v1317_v11 = vpack.c.bf16 %v927_v10, %v924_v7 }
 0x221   :  { %1362 = vst [vmem:[%s1935_s4 + $0x48] sm:$0xff] %v1322_v9  }
 0x222   :  { %1361 = vst [vmem:[%s1935_s4 + $0x40] sm:$0xff] %v1317_v11  }
 0x22c   :  { %v1543_v12 = vpop.f32.mrb[36].mxu1 }
 0x22d   :  { %v940_v13 = vpop.f32.mrb[37].mxu1 }
 0x22e   :  { %v1544_v14 = vpop.f32.mrb[38].mxu1 }
 0x22f   :  { %v1332_v15 = vpack.c.bf16 %v1544_v14, %v1543_v12  ;;  %v943_v16 = vpop.f32.mrb[39].mxu1 }
 0x230   :  { %v1327_v17 = vpack.c.bf16 %v943_v16, %v940_v13 }
 0x231   :  { %1364 = vst [vmem:[%s1935_s4 + $0x58] sm:$0xff] %v1332_v15  }
 0x232   :  { %1363 = vst [vmem:[%s1935_s4 + $0x50] sm:$0xff] %v1327_v17  }
 0x234   :  { %v1547_v18 = vpop.f32.mrb[40].mxu1 }
 0x235   :  { %v956_v19 = vpop.f32.mrb[41].mxu1 }
 0x236   :  { %v1548_v20 = vpop.f32.mrb[42].mxu1 }
 0x237   :  { %v1342_v21 = vpack.c.bf16 %v1548_v20, %v1547_v18  ;;  %v959_v24 = vpop.f32.mrb[43].mxu1 }
 0x238   :  { %v1337_v25 = vpack.c.bf16 %v959_v24, %v956_v19 }
 0x239   :  { %1366 = vst [vmem:[%s1935_s4 + $0x68] sm:$0xff] %v1342_v21  }
 0x23a   :  { %1365 = vst [vmem:[%s1935_s4 + $0x60] sm:$0xff] %v1337_v25  }
 0x23c   :  { %v1551_v26 = vpop.f32.mrb[44].mxu1 }
 0x23d   :  { %v972_v27 = vpop.f32.mrb[45].mxu1 }
 0x23e   :  { %v1552_v28 = vpop.f32.mrb[46].mxu1 }
 0x23f   :  { %v1352_v29 = vpack.c.bf16 %v1552_v28, %v1551_v26  ;;  %v975_v30 = vpop.f32.mrb[47].mxu1 }
 0x240   :  { %v1347_v31 = vpack.c.bf16 %v975_v30, %v972_v27 }
 0x241   :  { %1368 = vst [vmem:[%s1935_s4 + $0x78] sm:$0xff] %v1352_v29  }
 0x242   :  { %1367 = vst [vmem:[%s1935_s4 + $0x70] sm:$0xff] %v1347_v31  }

// kernel: simple_gnn_forward.5
= control target key start
LH: loop header
LB: loop body
LE: loop exit
PB: predicated region body
PF: predicated region fallthrough
CT: control target
= control target key end

     0   :  { %v711_v48 = vlaneseq  ;;  %s2285_s1 = inlined_call_operand.vmem [shape: bf16[256,128], index: 1, kind: input, shape index: {}]   ;;  %s2286_s0 = inlined_call_operand.vmem [shape: bf16[256,256], index: 0, kind: input, shape index: {}]   ;;  %s2287_s2 = inlined_call_operand.vmem [shape: f32[1,128], index: 2, kind: input, shape index: {}]   ;;  %s2288_s3 = inlined_call_operand.vmem [shape: f32[256,128], index: 3, kind: output, shape index: {}]  }
   0x1   :  { %v1345_v0 = vld [vmem:[%s2285_s1 + $0x40] sm:$0xff]   ;;  %v1347_v2 = vld [vmem:[%s2285_s1 + $0x48] sm:$0xff]   ;;  %v1349_v4 = vld [vmem:[%s2285_s1 + $0x50] sm:$0xff]  }
   0x2   :  { %v1346_v1 = vld [vmem:[%s2285_s1] sm:$0xff]   ;;  %1217 = vmatprep.subr.bf16.mxu0 %v1345_v0  ;;  %1329 = vmatprep.subr.bf16.mxu1 %v1345_v0  ;;  %v1348_v3 = vld [vmem:[%s2285_s1 + $0x8] sm:$0xff]   ;;  %v1350_v5 = vld [vmem:[%s2285_s1 + $0x10] sm:$0xff]   ;;  %v1701_v49 = vand.u32 127, %v711_v48 }
   0x3   :  { %1218 = vmatpush3.bf16.msra.mxu0 %v1346_v1  ;;  %1337 = vmatpush3.bf16.msra.mxu1 %v1346_v1  ;;  %v1351_v6 = vld [vmem:[%s2285_s1 + $0x58] sm:$0xff]   ;;  %v1353_v8 = vld [vmem:[%s2285_s1 + $0x60] sm:$0xff]   ;;  %v1355_v10 = vld [vmem:[%s2285_s1 + $0x68] sm:$0xff]  }
   0x4   :  { %1219 = vmatprep.subr.bf16.mxu0 %v1347_v2  ;;  %1330 = vmatprep.subr.bf16.mxu1 %v1347_v2  ;;  %v1352_v7 = vld [vmem:[%s2285_s1 + $0x18] sm:$0xff]   ;;  %v1354_v9 = vld [vmem:[%s2285_s1 + $0x20] sm:$0xff]   ;;  %v1356_v13 = vld [vmem:[%s2285_s1 + $0x28] sm:$0xff]   ;;  %vm713_vm0 = vcmp.lt.s32.totalorder %v1701_v49, 8 }
   0x5   :  { %v1363_v11 = vld [vmem:[%s2286_s0 + $0x4] ss:$8 sps:$4 sm:$0xff]   ;;  %v1357_v14 = vld [vmem:[%s2285_s1 + $0x70] sm:$0xff]   ;;  %v1359_v16 = vld [vmem:[%s2285_s1 + $0x78] sm:$0xff]  }
   0x6   :  { %v1366_v12 = vld [vmem:[%s2286_s0 + $0x84] ss:$8 sps:$4 sm:$0xff]   ;;  %372 = vmatprep.mubr.bf16.mxu0 %v1363_v11  ;;  %v1358_v15 = vld [vmem:[%s2285_s1 + $0x30] sm:$0xff]   ;;  %v1360_v17 = vld [vmem:[%s2285_s1 + $0x38] sm:$0xff]  }
   0x7   :  { %1220 = vmatpush3.bf16.msra.mxu0 %v1348_v3  ;;  %1338 = vmatpush3.bf16.msra.mxu1 %v1348_v3  ;;  %v1361_v18 = vld [vmem:[%s2286_s0] ss:$8 sps:$4 sm:$0xff]   ;;  %v1367_v20 = vld [vmem:[%s2286_s0 + $0x14] ss:$8 sps:$4 sm:$0xff]   ;;  %v1369_v22 = vld [vmem:[%s2286_s0 + $0x10] ss:$8 sps:$4 sm:$0xff]  }
   0x8   :  { %1221 = vmatprep.subr.bf16.mxu0 %v1349_v4  ;;  %1331 = vmatprep.subr.bf16.mxu1 %v1349_v4  ;;  %v1364_v19 = vld [vmem:[%s2286_s0 + $0x80] ss:$8 sps:$4 sm:$0xff]   ;;  %v1370_v21 = vld [vmem:[%s2286_s0 + $0x94] ss:$8 sps:$4 sm:$0xff]   ;;  %v1372_v23 = vld [vmem:[%s2286_s0 + $0x90] ss:$8 sps:$4 sm:$0xff]  }
   0x9   :  { %436 = vmatprep.mubr.bf16.mxu1 %v1366_v12  ;;  %v1373_v24 = vld [vmem:[%s2286_s0 + $0x24] ss:$8 sps:$4 sm:$0xff]   ;;  %v1375_v26 = vld [vmem:[%s2286_s0 + $0x20] ss:$8 sps:$4 sm:$0xff]   ;;  %v1379_v28 = vld [vmem:[%s2286_s0 + $0x34] ss:$8 sps:$4 sm:$0xff]  }
   0xa   :  { %v1376_v25 = vld [vmem:[%s2286_s0 + $0xa4] ss:$8 sps:$4 sm:$0xff]   ;;  %v1378_v27 = vld [vmem:[%s2286_s0 + $0xa0] ss:$8 sps:$4 sm:$0xff]   ;;  %v1382_v29 = vld [vmem:[%s2286_s0 + $0xb4] ss:$8 sps:$4 sm:$0xff]  }
   0xb   :  { %1222 = vmatpush3.bf16.msra.mxu0 %v1350_v5  ;;  %1339 = vmatpush3.bf16.msra.mxu1 %v1350_v5  ;;  %v1381_v30 = vld [vmem:[%s2286_s0 + $0x30] ss:$8 sps:$4 sm:$0xff]   ;;  %v1385_v32 = vld [vmem:[%s2286_s0 + $0x44] ss:$8 sps:$4 sm:$0xff]   ;;  %v1387_v34 = vld [vmem:[%s2286_s0 + $0x40] ss:$8 sps:$4 sm:$0xff]  }
   0xc   :  { %1223 = vmatprep.subr.bf16.mxu0 %v1351_v6  ;;  %1332 = vmatprep.subr.bf16.mxu1 %v1351_v6  ;;  %v1384_v31 = vld [vmem:[%s2286_s0 + $0xb0] ss:$8 sps:$4 sm:$0xff]   ;;  %v1388_v33 = vld [vmem:[%s2286_s0 + $0xc4] ss:$8 sps:$4 sm:$0xff]   ;;  %v1390_v35 = vld [vmem:[%s2286_s0 + $0xc0] ss:$8 sps:$4 sm:$0xff]  }
   0xd   :  { %v1391_v36 = vld [vmem:[%s2286_s0 + $0x54] ss:$8 sps:$4 sm:$0xff]   ;;  %v1393_v38 = vld [vmem:[%s2286_s0 + $0x50] ss:$8 sps:$4 sm:$0xff]   ;;  %v1397_v40 = vld [vmem:[%s2286_s0 + $0x64] ss:$8 sps:$4 sm:$0xff]  }
   0xe   :  { %v1394_v37 = vld [vmem:[%s2286_s0 + $0xd4] ss:$8 sps:$4 sm:$0xff]   ;;  %v1396_v39 = vld [vmem:[%s2286_s0 + $0xd0] ss:$8 sps:$4 sm:$0xff]   ;;  %v1400_v41 = vld [vmem:[%s2286_s0 + $0xe4] ss:$8 sps:$4 sm:$0xff]  }
   0xf   :  { %1224 = vmatpush3.bf16.msra.mxu0 %v1352_v7  ;;  %1340 = vmatpush3.bf16.msra.mxu1 %v1352_v7  ;;  %v1399_v42 = vld [vmem:[%s2286_s0 + $0x60] ss:$8 sps:$4 sm:$0xff]   ;;  %v1403_v44 = vld [vmem:[%s2286_s0 + $0x74] ss:$8 sps:$4 sm:$0xff]   ;;  %v1405_v46 = vld [vmem:[%s2286_s0 + $0x70] ss:$8 sps:$4 sm:$0xff]  }
  0x10   :  { %1225 = vmatprep.subr.bf16.mxu0 %v1353_v8  ;;  %1333 = vmatprep.subr.bf16.mxu1 %v1353_v8  ;;  %v1402_v43 = vld [vmem:[%s2286_s0 + $0xe0] ss:$8 sps:$4 sm:$0xff]   ;;  %v1406_v45 = vld [vmem:[%s2286_s0 + $0xf4] ss:$8 sps:$4 sm:$0xff]   ;;  %v1408_v47 = vld [vmem:[%s2286_s0 + $0xf0] ss:$8 sps:$4 sm:$0xff]  }
  0x11   :  { %v1706_v54 = vld [vmem:[%s2287_s2] ss:$0 sm:$0xff] }
  0x13   :  { %1226 = vmatpush3.bf16.msra.mxu0 %v1354_v9  ;;  %1341 = vmatpush3.bf16.msra.mxu1 %v1354_v9 }
  0x14   :  { %1227 = vmatprep.subr.bf16.mxu0 %v1355_v10  ;;  %1334 = vmatprep.subr.bf16.mxu1 %v1355_v10 }
  0x17   :  { %1228 = vmatpush3.bf16.msra.mxu0 %v1356_v13  ;;  %1342 = vmatpush3.bf16.msra.mxu1 %v1356_v13 }
  0x18   :  { %1229 = vmatprep.subr.bf16.mxu0 %v1357_v14  ;;  %1335 = vmatprep.subr.bf16.mxu1 %v1357_v14 }
  0x1b   :  { %1230 = vmatpush3.bf16.msra.mxu0 %v1358_v15  ;;  %1343 = vmatpush3.bf16.msra.mxu1 %v1358_v15 }
  0x1c   :  { %1231 = vmatprep.subr.bf16.mxu0 %v1359_v16  ;;  %1336 = vmatprep.subr.bf16.mxu1 %v1359_v16 }
  0x1f   :  { %1232 = vmatpush3.bf16.msra.mxu0 %v1360_v17  ;;  %1344 = vmatpush3.bf16.msra.mxu1 %v1360_v17 }
  0x22   :  { %373 = vmatmul.mubr.bf16.vlgmr.msra.gmra.mrb[0].mxu0 %v1361_v18  ;;  %437 = vmatmul.mubr.bf16.vlgmr.msra.gmra.mrb[0].mxu1 %v1364_v19 }
  0x23   :  { %380 = vmatprep.mubr.bf16.mxu0 %v1367_v20  ;;  %444 = vmatprep.mubr.bf16.mxu1 %v1370_v21 }
  0x2a   :  { %381 = vmatmul.mubr.bf16.gmra.mrb[4].mxu0 %v1369_v22  ;;  %445 = vmatmul.mubr.bf16.gmra.mrb[4].mxu1 %v1372_v23 }
  0x2b   :  { %388 = vmatprep.mubr.bf16.mxu0 %v1373_v24  ;;  %452 = vmatprep.mubr.bf16.mxu1 %v1376_v25 }
  0x32   :  { %389 = vmatmul.mubr.bf16.gmra.mrb[8].mxu0 %v1375_v26  ;;  %453 = vmatmul.mubr.bf16.gmra.mrb[8].mxu1 %v1378_v27 }
  0x33   :  { %396 = vmatprep.mubr.bf16.mxu0 %v1379_v28  ;;  %460 = vmatprep.mubr.bf16.mxu1 %v1382_v29 }
  0x3a   :  { %397 = vmatmul.mubr.bf16.gmra.mrb[12].mxu0 %v1381_v30  ;;  %461 = vmatmul.mubr.bf16.gmra.mrb[12].mxu1 %v1384_v31 }
  0x3b   :  { %404 = vmatprep.mubr.bf16.mxu0 %v1385_v32  ;;  %468 = vmatprep.mubr.bf16.mxu1 %v1388_v33 }
  0x42   :  { %405 = vmatmul.mubr.bf16.gmra.mrb[16].mxu0 %v1387_v34  ;;  %469 = vmatmul.mubr.bf16.gmra.mrb[16].mxu1 %v1390_v35 }
  0x43   :  { %412 = vmatprep.mubr.bf16.mxu0 %v1391_v36  ;;  %476 = vmatprep.mubr.bf16.mxu1 %v1394_v37 }
  0x4a   :  { %413 = vmatmul.mubr.bf16.gmra.mrb[20].mxu0 %v1393_v38  ;;  %477 = vmatmul.mubr.bf16.gmra.mrb[20].mxu1 %v1396_v39 }
  0x4b   :  { %420 = vmatprep.mubr.bf16.mxu0 %v1397_v40  ;;  %484 = vmatprep.mubr.bf16.mxu1 %v1400_v41 }
  0x52   :  { %421 = vmatmul.mubr.bf16.gmra.mrb[24].mxu0 %v1399_v42  ;;  %485 = vmatmul.mubr.bf16.gmra.mrb[24].mxu1 %v1402_v43 }
  0x53   :  { %428 = vmatprep.mubr.bf16.mxu0 %v1403_v44  ;;  %492 = vmatprep.mubr.bf16.mxu1 %v1406_v45 }
  0x5a   :  { %429 = vmatmul.mubr.bf16.gmra.mrb[28].mxu0 %v1405_v46  ;;  %493 = vmatmul.mubr.bf16.gmra.mrb[28].mxu1 %v1408_v47 }
  0xf5   :  { %v1233_v50 = vpop.f32.mrb[0].mxu0  ;;  %v1281_v51 = vpop.f32.mrb[0].mxu1 }
  0xf6   :  { %v1234_v52 = vpop.f32.mrb[1].mxu0  ;;  %v1282_v53 = vpop.f32.mrb[1].mxu1 }
  0xf7   :  { %v1235_v55 = vadd.f32 %v1234_v52, %v1233_v50  ;;  %v1283_v56 = vadd.f32 %v1282_v53, %v1281_v51  ;;  %v1236_v57 = vpop.f32.mrb[2].mxu0  ;;  %v1284_v58 = vpop.f32.mrb[2].mxu1 }
  0xf8   :  { %v1237_v59 = vpop.f32.mrb[3].mxu0  ;;  %v1285_v60 = vpop.f32.mrb[3].mxu1 }
  0xf9   :  { %v1238_v61 = vadd.f32 %v1237_v59, %v1236_v57  ;;  %v1286_v62 = vadd.f32 %v1285_v60, %v1284_v58  ;;  %v679_v63 = vadd.f32 %v1235_v55, %v1706_v54  ;;  %v695_v0 = vadd.f32 %v1283_v56, %v1706_v54 }
  0xfb   :  { %v1713_v1 = vsel %vm713_vm0, %v679_v63, -inf  ;;  %v696_v2 = vadd.f32 %v1286_v62, %v1706_v54  ;;  %v1723_v5 = vsel %vm713_vm0, %v695_v0, -inf  ;;  %v680_v12 = vadd.f32 %v1238_v61, %v1706_v54 }
  0xfc   :  { %746 = vmax.xlane.f32.xlu0 %v1713_v1 }
  0xfd   :  { %v1239_v3 = vpop.f32.mrb[4].mxu0  ;;  %v1719_v4 = vsel %vm713_vm0, %v696_v2, -inf  ;;  %v1287_v6 = vpop.f32.mrb[4].mxu1  ;;  %v1736_v21 = vsel %vm713_vm0, %v680_v12, -inf }
  0xfe   :  { %780 = vmax.xlane.f32.xlu1 %v1719_v4  ;;  %v1240_v7 = vpop.f32.mrb[5].mxu0  ;;  %v1288_v8 = vpop.f32.mrb[5].mxu1 }
  0xff   :  { %v1241_v9 = vadd.f32 %v1240_v7, %v1239_v3  ;;  %v1242_v10 = vpop.f32.mrb[6].mxu0  ;;  %v1289_v11 = vadd.f32 %v1288_v8, %v1287_v6  ;;  %v1290_v13 = vpop.f32.mrb[6].mxu1 }
 0x100   :  { %778 = vmax.xlane.f32.xlu0 %v1723_v5  ;;  %v1243_v14 = vpop.f32.mrb[7].mxu0  ;;  %v1291_v15 = vpop.f32.mrb[7].mxu1 }
 0x101   :  { %v1244_v16 = vadd.f32 %v1243_v14, %v1242_v10  ;;  %v681_v17 = vadd.f32 %v1241_v9, %v1706_v54  ;;  %v1292_v18 = vadd.f32 %v1291_v15, %v1290_v13  ;;  %v697_v19 = vadd.f32 %v1289_v11, %v1706_v54 }
 0x103   :  { %v1732_v20 = vsel %vm713_vm0, %v681_v17, -inf  ;;  %v682_v22 = vadd.f32 %v1244_v16, %v1706_v54  ;;  %v698_v23 = vadd.f32 %v1292_v18, %v1706_v54  ;;  %v1748_v26 = vsel %vm713_vm0, %v697_v19, -inf }
 0x104   :  { %750 = vmax.xlane.f32.xlu1 %v1732_v20  ;;  %748 = vmax.xlane.f32.xlu0 %v1736_v21 }
 0x105   :  { %v1245_v24 = vpop.f32.mrb[8].mxu0  ;;  %v1744_v25 = vsel %vm713_vm0, %v682_v22, -inf  ;;  %v1293_v27 = vpop.f32.mrb[8].mxu1  ;;  %v1754_v35 = vsel %vm713_vm0, %v698_v23, -inf }
 0x106   :  { %v1246_v28 = vpop.f32.mrb[9].mxu0  ;;  %v1294_v29 = vpop.f32.mrb[9].mxu1 }
 0x107   :  { %v1247_v30 = vadd.f32 %v1246_v28, %v1245_v24  ;;  %v1248_v31 = vpop.f32.mrb[10].mxu0  ;;  %v1295_v32 = vadd.f32 %v1294_v29, %v1293_v27  ;;  %v1296_v33 = vpop.f32.mrb[10].mxu1 }
 0x108   :  { %752 = vmax.xlane.f32.xlu1 %v1744_v25  ;;  %782 = vmax.xlane.f32.xlu0 %v1748_v26  ;;  %v1249_v34 = vpop.f32.mrb[11].mxu0  ;;  %v1297_v36 = vpop.f32.mrb[11].mxu1 }
 0x109   :  { %v1250_v37 = vadd.f32 %v1249_v34, %v1248_v31  ;;  %v683_v38 = vadd.f32 %v1247_v30, %v1706_v54  ;;  %v1298_v39 = vadd.f32 %v1297_v36, %v1296_v33  ;;  %v699_v40 = vadd.f32 %v1295_v32, %v1706_v54 }
 0x10b   :  { %v1760_v41 = vsel %vm713_vm0, %v683_v38, -inf  ;;  %v684_v42 = vadd.f32 %v1250_v37, %v1706_v54  ;;  %v700_v43 = vadd.f32 %v1298_v39, %v1706_v54  ;;  %v1772_v46 = vsel %vm713_vm0, %v699_v40, -inf }
 0x10c   :  { %784 = vmax.xlane.f32.xlu1 %v1754_v35  ;;  %754 = vmax.xlane.f32.xlu0 %v1760_v41 }
 0x10d   :  { %v1251_v44 = vpop.f32.mrb[12].mxu0  ;;  %v1768_v45 = vsel %vm713_vm0, %v684_v42, -inf  ;;  %v1299_v47 = vpop.f32.mrb[12].mxu1  ;;  %v1778_v57 = vsel %vm713_vm0, %v700_v43, -inf }
 0x10e   :  { %v1252_v48 = vpop.f32.mrb[13].mxu0  ;;  %v1300_v50 = vpop.f32.mrb[13].mxu1 }
 0x10f   :  { %v1253_v51 = vadd.f32 %v1252_v48, %v1251_v44  ;;  %v1254_v52 = vpop.f32.mrb[14].mxu0  ;;  %v1301_v53 = vadd.f32 %v1300_v50, %v1299_v47  ;;  %v1302_v55 = vpop.f32.mrb[14].mxu1 }
 0x110   :  { %756 = vmax.xlane.f32.xlu1 %v1768_v45  ;;  %786 = vmax.xlane.f32.xlu0 %v1772_v46  ;;  %v1255_v56 = vpop.f32.mrb[15].mxu0  ;;  %v1303_v58 = vpop.f32.mrb[15].mxu1 }
 0x111   :  { %v1256_v59 = vadd.f32 %v1255_v56, %v1254_v52  ;;  %v685_v60 = vadd.f32 %v1253_v51, %v1706_v54  ;;  %v1304_v61 = vadd.f32 %v1303_v58, %v1302_v55  ;;  %v701_v62 = vadd.f32 %v1301_v53, %v1706_v54 }
 0x113   :  { %v1784_v63 = vsel %vm713_vm0, %v685_v60, -inf  ;;  %v686_v0 = vadd.f32 %v1256_v59, %v1706_v54  ;;  %v702_v2 = vadd.f32 %v1304_v61, %v1706_v54  ;;  %v1796_v7 = vsel %vm713_vm0, %v701_v62, -inf }
 0x114   :  { %788 = vmax.xlane.f32.xlu1 %v1778_v57  ;;  %758 = vmax.xlane.f32.xlu0 %v1784_v63 }
 0x115   :  { %v1257_v3 = vpop.f32.mrb[16].mxu0  ;;  %v1792_v6 = vsel %vm713_vm0, %v686_v0, -inf  ;;  %v1305_v8 = vpop.f32.mrb[16].mxu1  ;;  %v1802_v16 = vsel %vm713_vm0, %v702_v2, -inf }
 0x116   :  { %v1258_v9 = vpop.f32.mrb[17].mxu0  ;;  %v1306_v10 = vpop.f32.mrb[17].mxu1 }
 0x117   :  { %v1259_v11 = vadd.f32 %v1258_v9, %v1257_v3  ;;  %v1260_v12 = vpop.f32.mrb[18].mxu0  ;;  %v1307_v13 = vadd.f32 %v1306_v10, %v1305_v8  ;;  %v1308_v14 = vpop.f32.mrb[18].mxu1 }
 0x118   :  { %760 = vmax.xlane.f32.xlu1 %v1792_v6  ;;  %790 = vmax.xlane.f32.xlu0 %v1796_v7  ;;  %v1261_v15 = vpop.f32.mrb[19].mxu0  ;;  %v1309_v17 = vpop.f32.mrb[19].mxu1 }
 0x119   :  { %v1262_v18 = vadd.f32 %v1261_v15, %v1260_v12  ;;  %v687_v19 = vadd.f32 %v1259_v11, %v1706_v54  ;;  %v1310_v22 = vadd.f32 %v1309_v17, %v1308_v14  ;;  %v703_v23 = vadd.f32 %v1307_v13, %v1706_v54 }
 0x11b   :  { %v1808_v24 = vsel %vm713_vm0, %v687_v19, -inf  ;;  %v688_v27 = vadd.f32 %v1262_v18, %v1706_v54  ;;  %v704_v28 = vadd.f32 %v1310_v22, %v1706_v54  ;;  %v1820_v31 = vsel %vm713_vm0, %v703_v23, -inf }
 0x11c   :  { %792 = vmax.xlane.f32.xlu1 %v1802_v16  ;;  %762 = vmax.xlane.f32.xlu0 %v1808_v24 }
 0x11d   :  { %v1263_v29 = vpop.f32.mrb[20].mxu0  ;;  %v1816_v30 = vsel %vm713_vm0, %v688_v27, -inf  ;;  %v1311_v32 = vpop.f32.mrb[20].mxu1  ;;  %v1826_v42 = vsel %vm713_vm0, %v704_v28, -inf }
 0x11e   :  { %v1264_v33 = vpop.f32.mrb[21].mxu0  ;;  %v1312_v34 = vpop.f32.mrb[21].mxu1 }
 0x11f   :  { %v1265_v36 = vadd.f32 %v1264_v33, %v1263_v29  ;;  %v1266_v37 = vpop.f32.mrb[22].mxu0  ;;  %v1313_v38 = vadd.f32 %v1312_v34, %v1311_v32  ;;  %v1314_v39 = vpop.f32.mrb[22].mxu1 }
 0x120   :  { %764 = vmax.xlane.f32.xlu1 %v1816_v30  ;;  %794 = vmax.xlane.f32.xlu0 %v1820_v31  ;;  %v1267_v40 = vpop.f32.mrb[23].mxu0  ;;  %v1315_v43 = vpop.f32.mrb[23].mxu1 }
 0x121   :  { %v1268_v44 = vadd.f32 %v1267_v40, %v1266_v37  ;;  %v689_v47 = vadd.f32 %v1265_v36, %v1706_v54  ;;  %v1316_v48 = vadd.f32 %v1315_v43, %v1314_v39  ;;  %v705_v50 = vadd.f32 %v1313_v38, %v1706_v54 }
 0x123   :  { %v1832_v51 = vsel %vm713_vm0, %v689_v47, -inf  ;;  %v690_v52 = vadd.f32 %v1268_v44, %v1706_v54  ;;  %v706_v53 = vadd.f32 %v1316_v48, %v1706_v54  ;;  %v1844_v58 = vsel %vm713_vm0, %v705_v50, -inf }
 0x124   :  { %796 = vmax.xlane.f32.xlu1 %v1826_v42  ;;  %766 = vmax.xlane.f32.xlu0 %v1832_v51 }
 0x125   :  { %v1269_v55 = vpop.f32.mrb[24].mxu0  ;;  %v1840_v56 = vsel %vm713_vm0, %v690_v52, -inf  ;;  %v1317_v59 = vpop.f32.mrb[24].mxu1  ;;  %v1850_v9 = vsel %vm713_vm0, %v706_v53, -inf }
 0x126   :  { %v1270_v60 = vpop.f32.mrb[25].mxu0  ;;  %v1318_v61 = vpop.f32.mrb[25].mxu1 }
 0x127   :  { %v1271_v62 = vadd.f32 %v1270_v60, %v1269_v55  ;;  %v1272_v0 = vpop.f32.mrb[26].mxu0  ;;  %v1319_v2 = vadd.f32 %v1318_v61, %v1317_v59  ;;  %v1320_v3 = vpop.f32.mrb[26].mxu1 }
 0x128   :  { %768 = vmax.xlane.f32.xlu1 %v1840_v56  ;;  %798 = vmax.xlane.f32.xlu0 %v1844_v58  ;;  %v1273_v8 = vpop.f32.mrb[27].mxu0  ;;  %v1321_v10 = vpop.f32.mrb[27].mxu1 }
 0x129   :  { %v1274_v11 = vadd.f32 %v1273_v8, %v1272_v0  ;;  %v691_v12 = vadd.f32 %v1271_v62, %v1706_v54  ;;  %v1322_v13 = vadd.f32 %v1321_v10, %v1320_v3  ;;  %v707_v14 = vadd.f32 %v1319_v2, %v1706_v54 }
 0x12b   :  { %v1856_v15 = vsel %vm713_vm0, %v691_v12, -inf  ;;  %v692_v17 = vadd.f32 %v1274_v11, %v1706_v54  ;;  %v708_v18 = vadd.f32 %v1322_v13, %v1706_v54  ;;  %v1868_v23 = vsel %vm713_vm0, %v707_v14, -inf }
 0x12c   :  { %800 = vmax.xlane.f32.xlu1 %v1850_v9  ;;  %770 = vmax.xlane.f32.xlu0 %v1856_v15 }
 0x12d   :  { %v1275_v19 = vpop.f32.mrb[28].mxu0  ;;  %v1864_v22 = vsel %vm713_vm0, %v692_v17, -inf  ;;  %v1323_v27 = vpop.f32.mrb[28].mxu1  ;;  %v1874_v38 = vsel %vm713_vm0, %v708_v18, -inf }
 0x12e   :  { %v1276_v28 = vpop.f32.mrb[29].mxu0  ;;  %v1324_v29 = vpop.f32.mrb[29].mxu1 }
 0x12f   :  { %v1277_v32 = vadd.f32 %v1276_v28, %v1275_v19  ;;  %v1278_v33 = vpop.f32.mrb[30].mxu0  ;;  %v1325_v34 = vadd.f32 %v1324_v29, %v1323_v27  ;;  %v1326_v36 = vpop.f32.mrb[30].mxu1 }
 0x130   :  { %772 = vmax.xlane.f32.xlu1 %v1864_v22  ;;  %802 = vmax.xlane.f32.xlu0 %v1868_v23  ;;  %v1279_v37 = vpop.f32.mrb[31].mxu0  ;;  %v1327_v39 = vpop.f32.mrb[31].mxu1 }
 0x131   :  { %v1280_v40 = vadd.f32 %v1279_v37, %v1278_v33  ;;  %v693_v43 = vadd.f32 %v1277_v32, %v1706_v54  ;;  %v1328_v44 = vadd.f32 %v1327_v39, %v1326_v36  ;;  %v709_v47 = vadd.f32 %v1325_v34, %v1706_v54 }
 0x133   :  { %v1880_v48 = vsel %vm713_vm0, %v693_v43, -inf  ;;  %v694_v50 = vadd.f32 %v1280_v40, %v1706_v54  ;;  %v710_v52 = vadd.f32 %v1328_v44, %v1706_v54  ;;  %v1892_v55 = vsel %vm713_vm0, %v709_v47, -inf }
 0x134   :  { %804 = vmax.xlane.f32.xlu1 %v1874_v38  ;;  %774 = vmax.xlane.f32.xlu0 %v1880_v48 }
 0x135   :  { %v1888_v53 = vsel %vm713_vm0, %v694_v50, -inf  ;;  %v1898_v59 = vsel %vm713_vm0, %v710_v52, -inf }
 0x138   :  { %776 = vmax.xlane.f32.xlu1 %v1888_v53  ;;  %806 = vmax.xlane.f32.xlu0 %v1892_v55 }
 0x13c   :  { %808 = vmax.xlane.f32.xlu1 %v1898_v59 }
 0x189   :  { %v747_v54 = vpop.xlane.xlu0 %746 }
 0x18a   :  { %v1902_v60 = vsub.f32 %v1713_v1, %v747_v54 }
 0x18b   :  { %v781_v62 = vpop.xlane.xlu1 %780 }
 0x18c   :  { %v842_v61 = vmul.f32 1.442695, %v1902_v60  ;;  %v1910_v8 = vsub.f32 %v1719_v4, %v781_v62 }
 0x18d   :  { %v779_v0 = vpop.xlane.xlu0 %778 }
 0x18e   :  { %1409 = vpow2.f32 %v842_v61  ;;  %v1906_v2 = vsub.f32 %v1723_v5, %v779_v0  ;;  %v876_v5 = vmul.f32 1.442695, %v1910_v8 }
 0x190   :  { %v874_v3 = vmul.f32 1.442695, %v1906_v2 }
 0x191   :  { %v751_v10 = vpop.xlane.xlu1 %750  ;;  %v749_v11 = vpop.xlane.xlu0 %748 }
 0x192   :  { %1411 = vpow2.f32 %v874_v3  ;;  %v1913_v12 = vsub.f32 %v1732_v20, %v751_v10  ;;  %v1916_v1 = vsub.f32 %v1736_v21, %v749_v11 }
 0x194   :  { %v846_v13 = vmul.f32 1.442695, %v1913_v12  ;;  %v844_v14 = vmul.f32 1.442695, %v1916_v1 }
 0x195   :  { %v753_v17 = vpop.xlane.xlu1 %752  ;;  %v783_v18 = vpop.xlane.xlu0 %782 }
 0x196   :  { %1413 = vpow2.f32 %v846_v13  ;;  %v1922_v4 = vsub.f32 %v1744_v25, %v753_v17  ;;  %v1925_v19 = vsub.f32 %v1748_v26, %v783_v18 }
 0x197   :  { %1415 = vpow2.f32 %v844_v14 }
 0x198   :  { %v1410_v20 = vpop.eup %1409  ;;  %v878_v21 = vmul.f32 1.442695, %v1925_v19  ;;  %1417 = vpow2.f32 %v876_v5  ;;  %v848_v27 = vmul.f32 1.442695, %v1922_v4 }
 0x199   :  { %v785_v28 = vpop.xlane.xlu1 %784  ;;  %v755_v29 = vpop.xlane.xlu0 %754  ;;  %v906_v32 = vsel %vm713_vm0, %v1410_v20, 0.0 }
 0x19a   :  { %v1932_v33 = vsub.f32 %v1754_v35, %v785_v28  ;;  %v1935_v25 = vsub.f32 %v1760_v41, %v755_v29  ;;  %938 = vadd.xlane.f32.xlu0 %v906_v32  ;;  %1419 = vpow2.f32 %v878_v21 }
 0x19b   :  { %1421 = vpow2.f32 %v848_v27 }
 0x19c   :  { %v1412_v26 = vpop.eup %1411  ;;  %v850_v34 = vmul.f32 1.442695, %v1935_v25  ;;  %v880_v36 = vmul.f32 1.442695, %v1932_v33 }
 0x19d   :  { %v757_v37 = vpop.xlane.xlu1 %756  ;;  %v787_v39 = vpop.xlane.xlu0 %786  ;;  %v922_v40 = vsel %vm713_vm0, %v1412_v26, 0.0 }
 0x19e   :  { %v1942_v43 = vsub.f32 %v1768_v45, %v757_v37  ;;  %v1945_v35 = vsub.f32 %v1772_v46, %v787_v39  ;;  %970 = vadd.xlane.f32.xlu0 %v922_v40  ;;  %1423 = vpow2.f32 %v850_v34 }
 0x19f   :  { %1425 = vpow2.f32 %v880_v36 }
 0x1a0   :  { %v1414_v41 = vpop.eup %1413  ;;  %v882_v44 = vmul.f32 1.442695, %v1945_v35  ;;  %v852_v50 = vmul.f32 1.442695, %v1942_v43 }
 0x1a1   :  { %v1416_v47 = vpop.eup %1415  ;;  %v789_v52 = vpop.xlane.xlu1 %788  ;;  %v908_v61 = vsel %vm713_vm0, %v1414_v41, 0.0 }
 0x1a2   :  { %v759_v54 = vpop.xlane.xlu0 %758  ;;  %v1952_v45 = vsub.f32 %v1778_v57, %v789_v52  ;;  %942 = vadd.xlane.f32.xlu0 %v908_v61  ;;  %v907_v62 = vsel %vm713_vm0, %v1416_v47, 0.0  ;;  %v1418_v0 = vpop.eup %1417  ;;  %1427 = vpow2.f32 %v882_v44 }
 0x1a3   :  { %v1955_v46 = vsub.f32 %v1784_v63, %v759_v54  ;;  %940 = vadd.xlane.f32.xlu1 %v907_v62  ;;  %1429 = vpow2.f32 %v852_v50  ;;  %v923_v5 = vsel %vm713_vm0, %v1418_v0, 0.0 }
 0x1a4   :  { %v1420_v10 = vpop.eup %1419  ;;  %v884_v11 = vmul.f32 1.442695, %v1952_v45 }
 0x1a5   :  { %v854_v3 = vmul.f32 1.442695, %v1955_v46  ;;  %v761_v13 = vpop.xlane.xlu1 %760  ;;  %v924_v17 = vsel %vm713_vm0, %v1420_v10, 0.0  ;;  %v1422_v18 = vpop.eup %1421 }
 0x1a6   :  { %v791_v14 = vpop.xlane.xlu0 %790  ;;  %v1962_v57 = vsub.f32 %v1792_v6, %v761_v13  ;;  %974 = vadd.xlane.f32.xlu0 %v924_v17  ;;  %v909_v32 = vsel %vm713_vm0, %v1422_v18, 0.0 }
 0x1a7   :  { %v1965_v63 = vsub.f32 %v1796_v7, %v791_v14  ;;  %1431 = vpow2.f32 %v854_v3  ;;  %972 = vadd.xlane.f32.xlu1 %v923_v5 }
 0x1a8   :  { %v1424_v21 = vpop.eup %1423  ;;  %1433 = vpow2.f32 %v884_v11  ;;  %v856_v6 = vmul.f32 1.442695, %v1962_v57 }
 0x1a9   :  { %v886_v20 = vmul.f32 1.442695, %v1965_v63  ;;  %v793_v27 = vpop.xlane.xlu1 %792  ;;  %v910_v26 = vsel %vm713_vm0, %v1424_v21, 0.0  ;;  %v1426_v34 = vpop.eup %1425 }
 0x1aa   :  { %v763_v28 = vpop.xlane.xlu0 %762  ;;  %v1974_v7 = vsub.f32 %v1802_v16, %v793_v27  ;;  %946 = vadd.xlane.f32.xlu0 %v910_v26  ;;  %v925_v44 = vsel %vm713_vm0, %v1426_v34, 0.0 }
 0x1ab   :  { %v1977_v29 = vsub.f32 %v1808_v24, %v763_v28  ;;  %1435 = vpow2.f32 %v886_v20  ;;  %944 = vadd.xlane.f32.xlu1 %v909_v32 }
 0x1ac   :  { %v1428_v37 = vpop.eup %1427  ;;  %1437 = vpow2.f32 %v856_v6  ;;  %v888_v16 = vmul.f32 1.442695, %v1974_v7 }
 0x1ad   :  { %v858_v36 = vmul.f32 1.442695, %v1977_v29  ;;  %v765_v39 = vpop.xlane.xlu1 %764  ;;  %v926_v47 = vsel %vm713_vm0, %v1428_v37, 0.0  ;;  %v1430_v50 = vpop.eup %1429 }
 0x1ae   :  { %v795_v40 = vpop.xlane.xlu0 %794  ;;  %v1986_v24 = vsub.f32 %v1816_v30, %v765_v39  ;;  %978 = vadd.xlane.f32.xlu0 %v926_v47  ;;  %v911_v3 = vsel %vm713_vm0, %v1430_v50, 0.0 }
 0x1af   :  { %v1989_v41 = vsub.f32 %v1820_v31, %v795_v40  ;;  %1439 = vpow2.f32 %v858_v36  ;;  %976 = vadd.xlane.f32.xlu1 %v925_v44 }
 0x1b0   :  { %1441 = vpow2.f32 %v888_v16  ;;  %v860_v30 = vmul.f32 1.442695, %v1986_v24 }
 0x1b1   :  { %v890_v52 = vmul.f32 1.442695, %v1989_v41  ;;  %v1432_v54 = vpop.eup %1431  ;;  %v797_v61 = vpop.xlane.xlu1 %796 }
 0x1b2   :  { %v767_v62 = vpop.xlane.xlu0 %766  ;;  %v1998_v31 = vsub.f32 %v1826_v42, %v797_v61  ;;  %v912_v10 = vsel %vm713_vm0, %v1432_v54, 0.0  ;;  %v1434_v11 = vpop.eup %1433 }
 0x1b3   :  { %v2001_v0 = vsub.f32 %v1832_v51, %v767_v62  ;;  %1443 = vpow2.f32 %v890_v52  ;;  %948 = vadd.xlane.f32.xlu1 %v911_v3  ;;  %950 = vadd.xlane.f32.xlu0 %v912_v10  ;;  %v927_v20 = vsel %vm713_vm0, %v1434_v11, 0.0 }
 0x1b4   :  { %1445 = vpow2.f32 %v860_v30  ;;  %v892_v42 = vmul.f32 1.442695, %v1998_v31 }
 0x1b5   :  { %v862_v13 = vmul.f32 1.442695, %v2001_v0  ;;  %v1436_v14 = vpop.eup %1435  ;;  %v769_v5 = vpop.xlane.xlu1 %768 }
 0x1b6   :  { %v799_v17 = vpop.xlane.xlu0 %798  ;;  %v2010_v51 = vsub.f32 %v1840_v56, %v769_v5  ;;  %v928_v21 = vsel %vm713_vm0, %v1436_v14, 0.0  ;;  %v1438_v6 = vpop.eup %1437 }
 0x1b7   :  { %v2013_v18 = vsub.f32 %v1844_v58, %v799_v17  ;;  %1447 = vpow2.f32 %v862_v13  ;;  %980 = vadd.xlane.f32.xlu1 %v927_v20  ;;  %982 = vadd.xlane.f32.xlu0 %v928_v21  ;;  %v913_v36 = vsel %vm713_vm0, %v1438_v6, 0.0 }
 0x1b8   :  { %1449 = vpow2.f32 %v892_v42  ;;  %v864_v56 = vmul.f32 1.442695, %v2010_v51 }
 0x1b9   :  { %v894_v27 = vmul.f32 1.442695, %v2013_v18  ;;  %v1440_v28 = vpop.eup %1439  ;;  %v801_v32 = vpop.xlane.xlu1 %800 }
 0x1ba   :  { %v771_v26 = vpop.xlane.xlu0 %770  ;;  %v2022_v58 = vsub.f32 %v1850_v9, %v801_v32  ;;  %v914_v37 = vsel %vm713_vm0, %v1440_v28, 0.0  ;;  %v1442_v16 = vpop.eup %1441 }
 0x1bb   :  { %v2025_v34 = vsub.f32 %v1856_v15, %v771_v26  ;;  %1451 = vpow2.f32 %v894_v27  ;;  %952 = vadd.xlane.f32.xlu1 %v913_v36  ;;  %954 = vadd.xlane.f32.xlu0 %v914_v37  ;;  %v929_v52 = vsel %vm713_vm0, %v1442_v16, 0.0 }
 0x1bc   :  { %1453 = vpow2.f32 %v864_v56  ;;  %v896_v9 = vmul.f32 1.442695, %v2022_v58 }
 0x1bd   :  { %v866_v39 = vmul.f32 1.442695, %v2025_v34  ;;  %v1444_v40 = vpop.eup %1443  ;;  %v773_v44 = vpop.xlane.xlu1 %772 }
 0x1be   :  { %v803_v47 = vpop.xlane.xlu0 %802  ;;  %v2034_v15 = vsub.f32 %v1864_v22, %v773_v44  ;;  %v930_v54 = vsel %vm713_vm0, %v1444_v40, 0.0  ;;  %v1446_v30 = vpop.eup %1445 }
 0x1bf   :  { %v2037_v50 = vsub.f32 %v1868_v23, %v803_v47  ;;  %1455 = vpow2.f32 %v866_v39  ;;  %984 = vadd.xlane.f32.xlu1 %v929_v52  ;;  %986 = vadd.xlane.f32.xlu0 %v930_v54  ;;  %v915_v13 = vsel %vm713_vm0, %v1446_v30, 0.0 }
 0x1c0   :  { %1457 = vpow2.f32 %v896_v9  ;;  %v868_v22 = vmul.f32 1.442695, %v2034_v15 }
 0x1c1   :  { %v898_v61 = vmul.f32 1.442695, %v2037_v50  ;;  %v1448_v62 = vpop.eup %1447  ;;  %v805_v3 = vpop.xlane.xlu1 %804 }
 0x1c2   :  { %v775_v10 = vpop.xlane.xlu0 %774  ;;  %v2046_v23 = vsub.f32 %v1874_v38, %v805_v3  ;;  %v916_v14 = vsel %vm713_vm0, %v1448_v62, 0.0  ;;  %v1450_v42 = vpop.eup %1449 }
 0x1c3   :  { %v2049_v11 = vsub.f32 %v1880_v48, %v775_v10  ;;  %1459 = vpow2.f32 %v898_v61  ;;  %956 = vadd.xlane.f32.xlu1 %v915_v13  ;;  %958 = vadd.xlane.f32.xlu0 %v916_v14  ;;  %v931_v27 = vsel %vm713_vm0, %v1450_v42, 0.0 }
 0x1c4   :  { %1461 = vpow2.f32 %v868_v22  ;;  %v900_v38 = vmul.f32 1.442695, %v2046_v23 }
 0x1c5   :  { %v870_v5 = vmul.f32 1.442695, %v2049_v11  ;;  %v1452_v17 = vpop.eup %1451  ;;  %v777_v20 = vpop.xlane.xlu1 %776 }
 0x1c6   :  { %v807_v21 = vpop.xlane.xlu0 %806  ;;  %v2058_v48 = vsub.f32 %v1888_v53, %v777_v20  ;;  %v932_v28 = vsel %vm713_vm0, %v1452_v17, 0.0  ;;  %v1454_v56 = vpop.eup %1453 }
 0x1c7   :  { %v2061_v6 = vsub.f32 %v1892_v55, %v807_v21  ;;  %1463 = vpow2.f32 %v870_v5  ;;  %988 = vadd.xlane.f32.xlu1 %v931_v27  ;;  %990 = vadd.xlane.f32.xlu0 %v932_v28  ;;  %v917_v37 = vsel %vm713_vm0, %v1454_v56, 0.0 }
 0x1c8   :  { %1465 = vpow2.f32 %v900_v38  ;;  %v872_v53 = vmul.f32 1.442695, %v2058_v48 }
 0x1c9   :  { %v902_v32 = vmul.f32 1.442695, %v2061_v6  ;;  %v1456_v26 = vpop.eup %1455  ;;  %v809_v36 = vpop.xlane.xlu1 %808 }
 0x1ca   :  { %v2070_v55 = vsub.f32 %v1898_v59, %v809_v36  ;;  %v918_v16 = vsel %vm713_vm0, %v1456_v26, 0.0  ;;  %v1458_v39 = vpop.eup %1457 }
 0x1cb   :  { %1467 = vpow2.f32 %v902_v32  ;;  %960 = vadd.xlane.f32.xlu1 %v917_v37  ;;  %962 = vadd.xlane.f32.xlu0 %v918_v16  ;;  %v933_v44 = vsel %vm713_vm0, %v1458_v39, 0.0 }
 0x1cc   :  { %1469 = vpow2.f32 %v872_v53  ;;  %v904_v9 = vmul.f32 1.442695, %v2070_v55 }
 0x1cd   :  { %v1460_v40 = vpop.eup %1459 }
 0x1ce   :  { %v934_v59 = vsel %vm713_vm0, %v1460_v40, 0.0  ;;  %v1462_v47 = vpop.eup %1461  ;;  %1471 = vpow2.f32 %v904_v9 }
 0x1cf   :  { %992 = vadd.xlane.f32.xlu1 %v933_v44  ;;  %994 = vadd.xlane.f32.xlu0 %v934_v59  ;;  %v919_v54 = vsel %vm713_vm0, %v1462_v47, 0.0 }
 0x1d1   :  { %v1464_v52 = vpop.eup %1463 }
 0x1d2   :  { %v920_v30 = vsel %vm713_vm0, %v1464_v52, 0.0  ;;  %v1466_v61 = vpop.eup %1465 }
 0x1d3   :  { %964 = vadd.xlane.f32.xlu1 %v919_v54  ;;  %966 = vadd.xlane.f32.xlu0 %v920_v30  ;;  %v935_v22 = vsel %vm713_vm0, %v1466_v61, 0.0 }
 0x1d5   :  { %v1468_v62 = vpop.eup %1467 }
 0x1d6   :  { %v936_v3 = vsel %vm713_vm0, %v1468_v62, 0.0  ;;  %v1470_v10 = vpop.eup %1469 }
 0x1d7   :  { %996 = vadd.xlane.f32.xlu1 %v935_v22  ;;  %998 = vadd.xlane.f32.xlu0 %v936_v3  ;;  %v921_v13 = vsel %vm713_vm0, %v1470_v10, 0.0 }
 0x1d8   :  { %v1472_v14 = vpop.eup %1471 }
 0x1d9   :  { %v937_v42 = vsel %vm713_vm0, %v1472_v14, 0.0 }
 0x1db   :  { %968 = vadd.xlane.f32.xlu1 %v921_v13 }
 0x1df   :  { %1000 = vadd.xlane.f32.xlu1 %v937_v42 }
 0x227   :  { %v939_v5 = vpop.xlane.xlu0 %938 }
 0x228   :  { %1473 = vlog2.f32 %v939_v5 }
 0x22b   :  { %v971_v17 = vpop.xlane.xlu0 %970 }
 0x22c   :  { %1475 = vlog2.f32 %v971_v17 }
 0x22f   :  { %v943_v38 = vpop.xlane.xlu0 %942 }
 0x230   :  { %v941_v20 = vpop.xlane.xlu1 %940  ;;  %1477 = vlog2.f32 %v943_v38 }
 0x231   :  { %1479 = vlog2.f32 %v941_v20 }
 0x232   :  { %v1474_v21 = vpop.eup %1473 }
 0x233   :  { %v1003_v27 = vmul.f32 0.6931472, %v1474_v21  ;;  %v975_v56 = vpop.xlane.xlu0 %974 }
 0x234   :  { %v973_v28 = vpop.xlane.xlu1 %972 }
 0x235   :  { %v1066_v32 = vsub.f32 %v1902_v60, %v1003_v27  ;;  %1481 = vlog2.f32 %v973_v28 }
 0x236   :  { %v1476_v26 = vpop.eup %1475  ;;  %1483 = vlog2.f32 %v975_v56 }
 0x237   :  { %v1098_v53 = vsel %vm713_vm0, %v1066_v32, 0.0  ;;  %v1035_v36 = vmul.f32 0.6931472, %v1476_v26  ;;  %v947_v16 = vpop.xlane.xlu0 %946 }
 0x238   :  { %1130 = vst [vmem:[%s2288_s3] sm:$0xff] %v1098_v53  ;;  %v945_v37 = vpop.xlane.xlu1 %944 }
 0x239   :  { %v1082_v39 = vsub.f32 %v1906_v2, %v1035_v36  ;;  %1485 = vlog2.f32 %v945_v37 }
 0x23a   :  { %v1478_v40 = vpop.eup %1477  ;;  %1487 = vlog2.f32 %v947_v16 }
 0x23b   :  { %v1480_v9 = vpop.eup %1479  ;;  %v1114_v60 = vsel %vm713_vm0, %v1082_v39, 0.0  ;;  %v1007_v44 = vmul.f32 0.6931472, %v1478_v40  ;;  %v979_v52 = vpop.xlane.xlu0 %978 }
 0x23c   :  { %1146 = vst [vmem:[%s2288_s3 + $0x80] sm:$0xff] %v1114_v60  ;;  %v1005_v59 = vmul.f32 0.6931472, %v1480_v9  ;;  %v977_v47 = vpop.xlane.xlu1 %976 }
 0x23d   :  { %v1068_v54 = vsub.f32 %v1913_v12, %v1007_v44  ;;  %1489 = vlog2.f32 %v977_v47 }
 0x23e   :  { %v1067_v2 = vsub.f32 %v1916_v1, %v1005_v59  ;;  %1491 = vlog2.f32 %v979_v52 }
 0x23f   :  { %v1482_v30 = vpop.eup %1481  ;;  %v1100_v61 = vsel %vm713_vm0, %v1068_v54, 0.0 }
 0x240   :  { %v1484_v62 = vpop.eup %1483  ;;  %v1099_v22 = vsel %vm713_vm0, %v1067_v2, 0.0  ;;  %1132 = vst [vmem:[%s2288_s3 + $0x10] sm:$0xff] %v1100_v61  ;;  %v1037_v3 = vmul.f32 0.6931472, %v1482_v30  ;;  %v949_v10 = vpop.xlane.xlu1 %948 }
 0x241   :  { %v951_v13 = vpop.xlane.xlu0 %950  ;;  %1131 = vst [vmem:[%s2288_s3 + $0x8] sm:$0xff] %v1099_v22  ;;  %v1039_v12 = vmul.f32 0.6931472, %v1484_v62  ;;  %1493 = vlog2.f32 %v949_v10 }
 0x242   :  { %v1083_v1 = vsub.f32 %v1910_v8, %v1037_v3  ;;  %1495 = vlog2.f32 %v951_v13 }
 0x243   :  { %v1486_v14 = vpop.eup %1485  ;;  %v1084_v42 = vsub.f32 %v1925_v19, %v1039_v12 }
 0x244   :  { %v1488_v5 = vpop.eup %1487  ;;  %v1115_v17 = vsel %vm713_vm0, %v1083_v1, 0.0  ;;  %v1009_v38 = vmul.f32 0.6931472, %v1486_v14  ;;  %v981_v20 = vpop.xlane.xlu1 %980 }
 0x245   :  { %v983_v21 = vpop.xlane.xlu0 %982  ;;  %1147 = vst [vmem:[%s2288_s3 + $0x88] sm:$0xff] %v1115_v17  ;;  %v1116_v27 = vsel %vm713_vm0, %v1084_v42, 0.0  ;;  %v1011_v28 = vmul.f32 0.6931472, %v1488_v5  ;;  %1497 = vlog2.f32 %v981_v20 }
 0x246   :  { %1148 = vst [vmem:[%s2288_s3 + $0x90] sm:$0xff] %v1116_v27  ;;  %v1069_v8 = vsub.f32 %v1922_v4, %v1009_v38  ;;  %1499 = vlog2.f32 %v983_v21 }
 0x247   :  { %v1490_v19 = vpop.eup %1489  ;;  %v1070_v56 = vsub.f32 %v1935_v25, %v1011_v28 }
 0x248   :  { %v1492_v32 = vpop.eup %1491  ;;  %v1101_v26 = vsel %vm713_vm0, %v1069_v8, 0.0  ;;  %v1041_v53 = vmul.f32 0.6931472, %v1490_v19  ;;  %v953_v36 = vpop.xlane.xlu1 %952 }
 0x249   :  { %v955_v37 = vpop.xlane.xlu0 %954  ;;  %1133 = vst [vmem:[%s2288_s3 + $0x18] sm:$0xff] %v1101_v26  ;;  %v1102_v16 = vsel %vm713_vm0, %v1070_v56, 0.0  ;;  %v1043_v39 = vmul.f32 0.6931472, %v1492_v32  ;;  %1501 = vlog2.f32 %v953_v36 }
 0x24a   :  { %1134 = vst [vmem:[%s2288_s3 + $0x20] sm:$0xff] %v1102_v16  ;;  %v1085_v4 = vsub.f32 %v1932_v33, %v1041_v53  ;;  %1503 = vlog2.f32 %v955_v37 }
 0x24b   :  { %v1494_v25 = vpop.eup %1493  ;;  %v1086_v40 = vsub.f32 %v1945_v35, %v1043_v39 }
 0x24c   :  { %v1496_v9 = vpop.eup %1495  ;;  %v1117_v60 = vsel %vm713_vm0, %v1085_v4, 0.0  ;;  %v1013_v44 = vmul.f32 0.6931472, %v1494_v25  ;;  %v985_v59 = vpop.xlane.xlu1 %984 }
 0x24d   :  { %v987_v47 = vpop.xlane.xlu0 %986  ;;  %1149 = vst [vmem:[%s2288_s3 + $0x98] sm:$0xff] %v1117_v60  ;;  %v1118_v52 = vsel %vm713_vm0, %v1086_v40, 0.0  ;;  %v1015_v54 = vmul.f32 0.6931472, %v1496_v9  ;;  %1505 = vlog2.f32 %v985_v59 }
 0x24e   :  { %1150 = vst [vmem:[%s2288_s3 + $0xa0] sm:$0xff] %v1118_v52  ;;  %v1071_v33 = vsub.f32 %v1942_v43, %v1013_v44  ;;  %1507 = vlog2.f32 %v987_v47 }
 0x24f   :  { %v1498_v35 = vpop.eup %1497  ;;  %v1072_v2 = vsub.f32 %v1955_v46, %v1015_v54 }
 0x250   :  { %v1500_v30 = vpop.eup %1499  ;;  %v1103_v61 = vsel %vm713_vm0, %v1071_v33, 0.0  ;;  %v1045_v62 = vmul.f32 0.6931472, %v1498_v35  ;;  %v957_v22 = vpop.xlane.xlu1 %956 }
 0x251   :  { %v959_v3 = vpop.xlane.xlu0 %958  ;;  %1135 = vst [vmem:[%s2288_s3 + $0x28] sm:$0xff] %v1103_v61  ;;  %v1104_v10 = vsel %vm713_vm0, %v1072_v2, 0.0  ;;  %v1047_v13 = vmul.f32 0.6931472, %v1500_v30  ;;  %1509 = vlog2.f32 %v957_v22 }
 0x252   :  { %1136 = vst [vmem:[%s2288_s3 + $0x30] sm:$0xff] %v1104_v10  ;;  %v1087_v43 = vsub.f32 %v1952_v45, %v1045_v62  ;;  %1511 = vlog2.f32 %v959_v3 }
 0x253   :  { %v1502_v46 = vpop.eup %1501  ;;  %v1088_v12 = vsub.f32 %v1965_v63, %v1047_v13 }
 0x254   :  { %v1504_v1 = vpop.eup %1503  ;;  %v1119_v14 = vsel %vm713_vm0, %v1087_v43, 0.0  ;;  %v1017_v42 = vmul.f32 0.6931472, %v1502_v46  ;;  %v989_v5 = vpop.xlane.xlu1 %988 }
 0x255   :  { %v991_v17 = vpop.xlane.xlu0 %990  ;;  %1151 = vst [vmem:[%s2288_s3 + $0xa8] sm:$0xff] %v1119_v14  ;;  %v1120_v38 = vsel %vm713_vm0, %v1088_v12, 0.0  ;;  %v1019_v20 = vmul.f32 0.6931472, %v1504_v1  ;;  %1513 = vlog2.f32 %v989_v5 }
 0x256   :  { %1152 = vst [vmem:[%s2288_s3 + $0xb0] sm:$0xff] %v1120_v38  ;;  %v1073_v45 = vsub.f32 %v1962_v57, %v1017_v42  ;;  %1515 = vlog2.f32 %v991_v17 }
 0x257   :  { %v1506_v63 = vpop.eup %1505  ;;  %v1074_v21 = vsub.f32 %v1977_v29, %v1019_v20 }
 0x258   :  { %v1508_v27 = vpop.eup %1507  ;;  %v1105_v28 = vsel %vm713_vm0, %v1073_v45, 0.0  ;;  %v1049_v8 = vmul.f32 0.6931472, %v1506_v63  ;;  %v961_v19 = vpop.xlane.xlu1 %960 }
 0x259   :  { %v963_v56 = vpop.xlane.xlu0 %962  ;;  %1137 = vst [vmem:[%s2288_s3 + $0x38] sm:$0xff] %v1105_v28  ;;  %v1106_v32 = vsel %vm713_vm0, %v1074_v21, 0.0  ;;  %v1051_v26 = vmul.f32 0.6931472, %v1508_v27  ;;  %1517 = vlog2.f32 %v961_v19 }
 0x25a   :  { %1138 = vst [vmem:[%s2288_s3 + $0x40] sm:$0xff] %v1106_v32  ;;  %v1089_v57 = vsub.f32 %v1974_v7, %v1049_v8  ;;  %1519 = vlog2.f32 %v963_v56 }
 0x25b   :  { %v1510_v29 = vpop.eup %1509  ;;  %v1090_v53 = vsub.f32 %v1989_v41, %v1051_v26 }
 0x25c   :  { %v1512_v36 = vpop.eup %1511  ;;  %v1121_v37 = vsel %vm713_vm0, %v1089_v57, 0.0  ;;  %v1021_v16 = vmul.f32 0.6931472, %v1510_v29  ;;  %v993_v39 = vpop.xlane.xlu1 %992 }
 0x25d   :  { %v995_v4 = vpop.xlane.xlu0 %994  ;;  %1153 = vst [vmem:[%s2288_s3 + $0xb8] sm:$0xff] %v1121_v37  ;;  %v1122_v25 = vsel %vm713_vm0, %v1090_v53, 0.0  ;;  %v1023_v40 = vmul.f32 0.6931472, %v1512_v36  ;;  %1521 = vlog2.f32 %v993_v39 }
 0x25e   :  { %1154 = vst [vmem:[%s2288_s3 + $0xc0] sm:$0xff] %v1122_v25  ;;  %v1075_v7 = vsub.f32 %v1986_v24, %v1021_v16  ;;  %1523 = vlog2.f32 %v995_v4 }
 0x25f   :  { %v1514_v41 = vpop.eup %1513  ;;  %v1076_v9 = vsub.f32 %v2001_v0, %v1023_v40 }
 0x260   :  { %v1516_v60 = vpop.eup %1515  ;;  %v1107_v44 = vsel %vm713_vm0, %v1075_v7, 0.0  ;;  %v1053_v59 = vmul.f32 0.6931472, %v1514_v41  ;;  %v965_v47 = vpop.xlane.xlu1 %964 }
 0x261   :  { %v967_v52 = vpop.xlane.xlu0 %966  ;;  %1139 = vst [vmem:[%s2288_s3 + $0x48] sm:$0xff] %v1107_v44  ;;  %v1108_v54 = vsel %vm713_vm0, %v1076_v9, 0.0  ;;  %v1055_v33 = vmul.f32 0.6931472, %v1516_v60  ;;  %1525 = vlog2.f32 %v965_v47 }
 0x262   :  { %1140 = vst [vmem:[%s2288_s3 + $0x50] sm:$0xff] %v1108_v54  ;;  %v1091_v24 = vsub.f32 %v1998_v31, %v1053_v59  ;;  %1527 = vlog2.f32 %v967_v52 }
 0x263   :  { %v1518_v0 = vpop.eup %1517  ;;  %v1092_v35 = vsub.f32 %v2013_v18, %v1055_v33 }
 0x264   :  { %v1520_v2 = vpop.eup %1519  ;;  %v1123_v30 = vsel %vm713_vm0, %v1091_v24, 0.0  ;;  %v1025_v61 = vmul.f32 0.6931472, %v1518_v0  ;;  %v997_v62 = vpop.xlane.xlu1 %996 }
 0x265   :  { %v999_v22 = vpop.xlane.xlu0 %998  ;;  %1155 = vst [vmem:[%s2288_s3 + $0xc8] sm:$0xff] %v1123_v30  ;;  %v1124_v3 = vsel %vm713_vm0, %v1092_v35, 0.0  ;;  %v1027_v10 = vmul.f32 0.6931472, %v1520_v2  ;;  %1529 = vlog2.f32 %v997_v62 }
 0x266   :  { %1156 = vst [vmem:[%s2288_s3 + $0xd0] sm:$0xff] %v1124_v3  ;;  %v1077_v31 = vsub.f32 %v2010_v51, %v1025_v61  ;;  %1531 = vlog2.f32 %v999_v22 }
 0x267   :  { %v1522_v18 = vpop.eup %1521  ;;  %v1078_v13 = vsub.f32 %v2025_v34, %v1027_v10 }
 0x268   :  { %v1524_v43 = vpop.eup %1523  ;;  %v1109_v46 = vsel %vm713_vm0, %v1077_v31, 0.0  ;;  %v1057_v12 = vmul.f32 0.6931472, %v1522_v18  ;;  %v969_v1 = vpop.xlane.xlu1 %968 }
 0x269   :  { %1141 = vst [vmem:[%s2288_s3 + $0x58] sm:$0xff] %v1109_v46  ;;  %v1110_v14 = vsel %vm713_vm0, %v1078_v13, 0.0  ;;  %v1059_v42 = vmul.f32 0.6931472, %v1524_v43  ;;  %1533 = vlog2.f32 %v969_v1 }
 0x26a   :  { %1142 = vst [vmem:[%s2288_s3 + $0x60] sm:$0xff] %v1110_v14  ;;  %v1093_v51 = vsub.f32 %v2022_v58, %v1057_v12 }
 0x26b   :  { %v1526_v34 = vpop.eup %1525  ;;  %v1094_v5 = vsub.f32 %v2037_v50, %v1059_v42 }
 0x26c   :  { %v1528_v17 = vpop.eup %1527  ;;  %v1125_v38 = vsel %vm713_vm0, %v1093_v51, 0.0  ;;  %v1029_v20 = vmul.f32 0.6931472, %v1526_v34  ;;  %v1001_v45 = vpop.xlane.xlu1 %1000 }
 0x26d   :  { %1157 = vst [vmem:[%s2288_s3 + $0xd8] sm:$0xff] %v1125_v38  ;;  %v1126_v63 = vsel %vm713_vm0, %v1094_v5, 0.0  ;;  %v1031_v21 = vmul.f32 0.6931472, %v1528_v17  ;;  %1535 = vlog2.f32 %v1001_v45 }
 0x26e   :  { %1158 = vst [vmem:[%s2288_s3 + $0xe0] sm:$0xff] %v1126_v63  ;;  %v1079_v58 = vsub.f32 %v2034_v15, %v1029_v20 }
 0x26f   :  { %v1530_v50 = vpop.eup %1529  ;;  %v1080_v27 = vsub.f32 %v2049_v11, %v1031_v21 }
 0x270   :  { %v1532_v28 = vpop.eup %1531  ;;  %v1111_v8 = vsel %vm713_vm0, %v1079_v58, 0.0  ;;  %v1061_v19 = vmul.f32 0.6931472, %v1530_v50 }
 0x271   :  { %1143 = vst [vmem:[%s2288_s3 + $0x68] sm:$0xff] %v1111_v8  ;;  %v1112_v56 = vsel %vm713_vm0, %v1080_v27, 0.0  ;;  %v1063_v32 = vmul.f32 0.6931472, %v1532_v28 }
 0x272   :  { %1144 = vst [vmem:[%s2288_s3 + $0x70] sm:$0xff] %v1112_v56  ;;  %v1095_v15 = vsub.f32 %v2046_v23, %v1061_v19 }
 0x273   :  { %v1534_v11 = vpop.eup %1533  ;;  %v1096_v26 = vsub.f32 %v2061_v6, %v1063_v32 }
 0x274   :  { %v1127_v57 = vsel %vm713_vm0, %v1095_v15, 0.0  ;;  %v1033_v29 = vmul.f32 0.6931472, %v1534_v11 }
 0x275   :  { %1159 = vst [vmem:[%s2288_s3 + $0xe8] sm:$0xff] %v1127_v57  ;;  %v1128_v53 = vsel %vm713_vm0, %v1096_v26, 0.0 }
 0x276   :  { %1160 = vst [vmem:[%s2288_s3 + $0xf0] sm:$0xff] %v1128_v53  ;;  %v1081_v23 = vsub.f32 %v2058_v48, %v1033_v29 }
 0x277   :  { %v1536_v36 = vpop.eup %1535 }
 0x278   :  { %v1113_v6 = vsel %vm713_vm0, %v1081_v23, 0.0  ;;  %v1065_v37 = vmul.f32 0.6931472, %v1536_v36 }
 0x279   :  { %1145 = vst [vmem:[%s2288_s3 + $0x78] sm:$0xff] %v1113_v6 }
 0x27a   :  { %v1097_v16 = vsub.f32 %v2070_v55, %v1065_v37 }
 0x27c   :  { %v1129_v39 = vsel %vm713_vm0, %v1097_v16, 0.0 }
 0x27d   :  { %1161 = vst [vmem:[%s2288_s3 + $0xf8] sm:$0xff] %v1129_v39 }

</bundles_post_ra>
